<compile_context>
chip_gen: v5e
topology: v5e:2x2
jax: 0.10.0
libtpu: 0.0.40
codegen_flags: <defaults>
</compile_context>

<pallas_src>
import functools

import jax
import jax.numpy as jnp
from jax.experimental import pallas as pl
from jax.experimental.pallas import tpu as pltpu

BERT_DIM = 1024
PROJ_DIM = 128
LSTM_HIDDEN = 50
LSTM_LAYERS = 2
OUT_DIM = 2
GATE_PAD = 128          # each LSTM gate padded to a full 128-lane tile


# --------------------------------------------------------------------------
# Kernel 1: linear1 + ReLU, hoisted out of the sequential loop.
#   in : bert_out block (B, TS, 1024) f32, w1 (1024,128) bf16, b1 (1,128) f32
#   out: projected activations block (TS, B, 128) bf16 (sequence-major)
# --------------------------------------------------------------------------
def _proj_relu_kernel(x_ref, w1_ref, b1_ref, o_ref):
    B = x_ref.shape[0]
    for b in range(B):  # B is small & static; per-b dots keep stores lane-dense
        x = x_ref[b].astype(jnp.bfloat16)                              # (TS, 1024)
        y = jnp.dot(x, w1_ref[...], preferred_element_type=jnp.float32)
        y = jnp.maximum(y + b1_ref[...], 0.0)                          # (TS, 128)
        o_ref[:, pl.ds(b, 1), :] = y.astype(o_ref.dtype)[:, None, :]


# --------------------------------------------------------------------------
# Kernel 2: 2-layer LSTM over time (in-kernel loop) + linear2.
#   Everything stays resident in VMEM; one grid step total.
# --------------------------------------------------------------------------
def _lstm_head_kernel(x_ref,                    # (S, B, 128) bf16
                      wg0_ref, bg0_ref,         # (256, 512) bf16, (1, 512) f32
                      wg1_ref, bg1_ref,         # (256, 512) bf16, (1, 512) f32
                      w2_ref, b2_ref,           # (128, 2) f32, (1, 2) f32
                      h0_ref, c0_ref,           # (2, B, 128) f32 (zero-padded)
                      out_ref,                  # (B, S, 2) f32
                      h_st, c_st, hs_st):       # VMEM scratch
    S, B, _ = x_ref.shape
    GP = GATE_PAD

    h_st[...] = h0_ref[...]
    c_st[...] = c0_ref[...]

    def cell(layer, inp_bf16, wg_ref, bg_ref):
        h_prev = h_st[layer]                                           # (B, GP) f32
        c_prev = c_st[layer]
        # Fused input/hidden matmul: [x_t ; h_prev] @ W_stacked (tile-aligned concat).
        zin = jnp.concatenate([inp_bf16, h_prev.astype(jnp.bfloat16)], axis=-1)
        gates = (jnp.dot(zin, wg_ref[...], preferred_element_type=jnp.float32)
                 + bg_ref[...])                                        # (B, 4*GP) f32
        # Gate slices at 128-lane boundaries (padded lanes carry zeros -> benign).
        i_g = jax.nn.sigmoid(gates[:, 0 * GP:1 * GP])
        f_g = jax.nn.sigmoid(gates[:, 1 * GP:2 * GP])
        g_g = jnp.tanh(gates[:, 2 * GP:3 * GP])
        o_g = jax.nn.sigmoid(gates[:, 3 * GP:4 * GP])
        c_new = f_g * c_prev + i_g * g_g
        h_new = o_g * jnp.tanh(c_new)
        h_st[layer] = h_new
        c_st[layer] = c_new
        return h_new

    @pl.loop(0, S)
    def _(t):
        x_t = x_ref[t]                                                 # (B, 128) bf16
        h1 = cell(0, x_t, wg0_ref, bg0_ref)
        h2 = cell(1, h1.astype(jnp.bfloat16), wg1_ref, bg1_ref)
        hs_st[t] = h2                                                  # lane-dense store

    # linear2 applied once over the whole sequence; single (masked) output store.
    hs = hs_st[...]                                                    # (S, B, GP) f32
    w2 = w2_ref[...]
    b2 = b2_ref[...]
    for b in range(B):
        y = jnp.dot(hs[:, b, :], w2, preferred_element_type=jnp.float32) + b2
        out_ref[b] = y                                                 # (S, 2)


# --------------------------------------------------------------------------
# Wrapper
# --------------------------------------------------------------------------
def _pick_seq_tile(S, B):
    """Largest sequence tile (multiple of 8, dividing S) keeping ~4 MiB blocks."""
    budget_rows = max(8, (4 * 1024 * 1024) // (B * BERT_DIM * 4))
    for cand in (512, 256, 128, 64, 32, 16, 8):
        if cand <= budget_rows and S % cand == 0:
            return cand
    return S


@jax.jit
def si_model1_forward(bert_out, packed, h0, c0):
    """bert_out: (B, S, 1024); h0/c0: (LSTM_LAYERS, B, LSTM_HIDDEN). Returns (B, S, 2)."""
    B, S, _ = bert_out.shape
    TS = _pick_seq_tile(S, B)

    # ---- Kernel 1: projection (parallel grid; megacore-friendly on v7x) ----
    xproj = pl.pallas_call(
        _proj_relu_kernel,
        out_shape=jax.ShapeDtypeStruct((S, B, PROJ_DIM), jnp.bfloat16),
        grid=(S // TS,),
        in_specs=[
            pl.BlockSpec((B, TS, BERT_DIM), lambda i: (0, i, 0)),
            pl.BlockSpec((BERT_DIM, PROJ_DIM), lambda i: (0, 0)),
            pl.BlockSpec((1, PROJ_DIM), lambda i: (0, 0)),
        ],
        out_specs=pl.BlockSpec((TS, B, PROJ_DIM), lambda i: (i, 0, 0)),
        compiler_params=pltpu.CompilerParams(dimension_semantics=("parallel",)),
    )(bert_out, packed["w1"], packed["b1"])

    # Pad initial states to the 128-lane gate width (padded lanes stay zero).
    pad = GATE_PAD - LSTM_HIDDEN
    h0p = jnp.pad(h0.astype(jnp.float32), ((0, 0), (0, 0), (0, pad)))
    c0p = jnp.pad(c0.astype(jnp.float32), ((0, 0), (0, 0), (0, pad)))

    full = lambda shape: pl.BlockSpec(shape, lambda i: (0,) * len(shape))

    # ---- Kernel 2: LSTM + linear2 in a single grid step ----
    out = pl.pallas_call(
        _lstm_head_kernel,
        out_shape=jax.ShapeDtypeStruct((B, S, OUT_DIM), jnp.float32),
        grid=(1,),
        in_specs=[
            full((S, B, PROJ_DIM)),
            full((2 * GATE_PAD, 4 * GATE_PAD)), full((1, 4 * GATE_PAD)),
            full((2 * GATE_PAD, 4 * GATE_PAD)), full((1, 4 * GATE_PAD)),
            full((GATE_PAD, OUT_DIM)), full((1, OUT_DIM)),
            full((LSTM_LAYERS, B, GATE_PAD)), full((LSTM_LAYERS, B, GATE_PAD)),
        ],
        out_specs=full((B, S, OUT_DIM)),
        scratch_shapes=[
            pltpu.VMEM((LSTM_LAYERS, B, GATE_PAD), jnp.float32),   # h state
            pltpu.VMEM((LSTM_LAYERS, B, GATE_PAD), jnp.float32),   # c state
            pltpu.VMEM((S, B, GATE_PAD), jnp.float32),             # per-step hidden
        ],
        compiler_params=pltpu.CompilerParams(dimension_semantics=("arbitrary",)),
    )(xproj, packed["wg0"], packed["bg0"], packed["wg1"], packed["bg1"],
      packed["w2"], packed["b2"], h0p, c0p)
    return out


# --------------------------------------------------------------------------
# Parameters (PyTorch layout) + offline packing into the kernel layout
# --------------------------------------------------------------------------
def init_params(key):
    """Deterministic synthetic parameters matching the torch module's shapes."""
    ks = jax.random.split(key, 12)
    scale = 0.05
    H4 = 4 * LSTM_HIDDEN
    return {
        # linear1: torch weight (128, 1024) -> stored transposed (1024, 128)
        "w1": scale * jax.random.normal(ks[0], (BERT_DIM, PROJ_DIM), jnp.float32),
        "b1": scale * jax.random.normal(ks[1], (1, PROJ_DIM), jnp.float32),
        # LSTM layer 0: W_ih (200,128) -> (128,200); W_hh (200,50) -> (50,200)
        "wih0": scale * jax.random.normal(ks[2], (PROJ_DIM, H4), jnp.float32),
        "whh0": scale * jax.random.normal(ks[3], (LSTM_HIDDEN, H4), jnp.float32),
        "bl0": scale * jax.random.normal(ks[4], (1, H4), jnp.float32),  # b_ih + b_hh
        # LSTM layer 1
        "wih1": scale * jax.random.normal(ks[5], (LSTM_HIDDEN, H4), jnp.float32),
        "whh1": scale * jax.random.normal(ks[6], (LSTM_HIDDEN, H4), jnp.float32),
        "bl1": scale * jax.random.normal(ks[7], (1, H4), jnp.float32),
        # linear2: torch weight (2, 50) -> stored transposed (50, 2)
        "w2": scale * jax.random.normal(ks[8], (LSTM_HIDDEN, OUT_DIM), jnp.float32),
        "b2": scale * jax.random.normal(ks[9], (1, OUT_DIM), jnp.float32),
    }


def pack_params(p):
    """Pad each gate to 128 lanes, stack [W_ih ; W_hh] per layer, cast to bf16."""
    H, GP = LSTM_HIDDEN, GATE_PAD

    def pad_gate_cols(w):  # (rows, 4H) -> (rows, 4*GP), zero-padded per gate
        rows = w.shape[0]
        out = jnp.zeros((rows, 4 * GP), jnp.float32)
        for g in range(4):
            out = out.at[:, g * GP:g * GP + H].set(w[:, g * H:(g + 1) * H])
        return out

    wg0 = jnp.zeros((2 * GP, 4 * GP), jnp.float32)
    wg0 = wg0.at[:PROJ_DIM, :].set(pad_gate_cols(p["wih0"]))
    wg0 = wg0.at[GP:GP + H, :].set(pad_gate_cols(p["whh0"]))

    wg1 = jnp.zeros((2 * GP, 4 * GP), jnp.float32)
    wg1 = wg1.at[:H, :].set(pad_gate_cols(p["wih1"]))
    wg1 = wg1.at[GP:GP + H, :].set(pad_gate_cols(p["whh1"]))

    w2p = jnp.zeros((GP, OUT_DIM), jnp.float32).at[:H, :].set(p["w2"])

    return {
        "w1": p["w1"].astype(jnp.bfloat16),
        "b1": p["b1"].astype(jnp.float32),
        "wg0": wg0.astype(jnp.bfloat16),
        "bg0": pad_gate_cols(p["bl0"]),
        "wg1": wg1.astype(jnp.bfloat16),
        "bg1": pad_gate_cols(p["bl1"]),
        "w2": w2p,
        "b2": p["b2"].astype(jnp.float32),
    }


# --------------------------------------------------------------------------
# Pure-JAX reference (f32) for a sanity check
# --------------------------------------------------------------------------
def si_model1_reference(bert_out, params, h0, c0):
    H = LSTM_HIDDEN
    x = jnp.maximum(bert_out @ params["w1"] + params["b1"], 0.0)       # (B, S, 128)

    def lstm_layer(inp, h, c, wih, whh, bl):
        def step(carry, x_t):
            h, c = carry
            gates = x_t @ wih + h @ whh + bl
            i = jax.nn.sigmoid(gates[:, 0:H])
            f = jax.nn.sigmoid(gates[:, H:2 * H])
            g = jnp.tanh(gates[:, 2 * H:3 * H])
            o = jax.nn.sigmoid(gates[:, 3 * H:4 * H])
            c = f * c + i * g
            h = o * jnp.tanh(c)
            return (h, c), h
        _, hs = jax.lax.scan(step, (h, c), jnp.transpose(inp, (1, 0, 2)))
        return jnp.transpose(hs, (1, 0, 2))                            # (B, S, H)

    x1 = lstm_layer(x, h0[0], c0[0], params["wih0"], params["whh0"], params["bl0"])
    x2 = lstm_layer(x1, h0[1], c0[1], params["wih1"], params["whh1"], params["bl1"])
    return x2 @ params["w2"] + params["b2"]                            # (B, S, 2)


if __name__ == "__main__":
    B, S = 2, 8
    key = jax.random.PRNGKey(0)
    k_in, k_h, k_c, k_p = jax.random.split(key, 4)

    # Surrogate for the frozen RoBERTa-large last_hidden_state.
    bert_out = jax.random.normal(k_in, (B, S, BERT_DIM), jnp.float32)
    # forward() draws (h, c) ~ randn when hidden is None.
    h0 = jax.random.normal(k_h, (LSTM_LAYERS, B, LSTM_HIDDEN), jnp.float32)
    c0 = jax.random.normal(k_c, (LSTM_LAYERS, B, LSTM_HIDDEN), jnp.float32)

    params = init_params(k_p)
    packed = pack_params(params)

    out = si_model1_forward(bert_out, packed, h0, c0)
    jax.block_until_ready(out)
    assert out.shape == (B, S, OUT_DIM), out.shape

    ref = si_model1_reference(bert_out, params, h0, c0)
    assert jnp.allclose(out, ref, atol=1e-1, rtol=1e-1), "kernel/reference mismatch"

    print("KERNEL_OK")
</pallas_src>

<mosaic_0001>
module attributes {stable_mosaic.version = 11 : i64} {
  func.func @_proj_relu_kernel(%arg0: i32, %arg1: memref<2x8x1024xf32, #tpu.memory_space<vmem>>, %arg2: memref<1024x128xbf16, #tpu.memory_space<vmem>>, %arg3: memref<1x128xf32, #tpu.memory_space<vmem>>, %arg4: memref<8x2x128xbf16, #tpu.memory_space<vmem>>) attributes {dimension_semantics = [#tpu.dimension_semantics<parallel>], iteration_bounds = array<i64: 1>, scalar_prefetch = 0 : i64, scratch_operands = 0 : i64, tpu.core_type = #tpu.core_type<tc>, window_params = [{transform_indices = @transform_0, window_bounds = array<i64: 2, 8, 1024>}, {pipeline_mode = #tpu.pipeline_mode<synchronous>, transform_indices = @transform_1, window_bounds = array<i64: 1024, 128>}, {pipeline_mode = #tpu.pipeline_mode<synchronous>, transform_indices = @transform_2, window_bounds = array<i64: 1, 128>}, {transform_indices = @transform_3, window_bounds = array<i64: 8, 2, 128>}]} {
    %c0 = arith.constant 0 : index
    %c0_0 = arith.constant 0 : index
    %c0_1 = arith.constant 0 : index
    %0 = vector.load %arg1[%c0, %c0_0, %c0_1] : memref<2x8x1024xf32, #tpu.memory_space<vmem>>, vector<1x8x1024xf32>
    %1 = vector.shape_cast %0 : vector<1x8x1024xf32> to vector<8x1024xf32>
    %2 = arith.truncf %1 : vector<8x1024xf32> to vector<8x1024xbf16>
    %c0_2 = arith.constant 0 : index
    %c0_3 = arith.constant 0 : index
    %3 = vector.load %arg2[%c0_2, %c0_3] : memref<1024x128xbf16, #tpu.memory_space<vmem>>, vector<1024x128xbf16>
    %cst = arith.constant dense<0.000000e+00> : vector<8x128xf32>
    %4 = tpu.matmul %2, %3, %cst {dimension_numbers = #tpu.dot_dimension_numbers<[1], [0], [0], [1], [0, 0, 1, 1], [], []>} : vector<8x1024xbf16>, vector<1024x128xbf16>, vector<8x128xf32> -> vector<8x128xf32>
    %c0_4 = arith.constant 0 : index
    %c0_5 = arith.constant 0 : index
    %5 = vector.load %arg3[%c0_4, %c0_5] : memref<1x128xf32, #tpu.memory_space<vmem>>, vector<1x128xf32>
    %6 = vector.broadcast %5 : vector<1x128xf32> to vector<8x128xf32>
    %7 = arith.addf %4, %6 : vector<8x128xf32>
    %cst_6 = arith.constant 0.000000e+00 : f32
    %8 = vector.broadcast %cst_6 : f32 to vector<8x128xf32>
    %9 = arith.maximumf %7, %8 : vector<8x128xf32>
    %10 = arith.truncf %9 : vector<8x128xf32> to vector<8x128xbf16>
    %11 = vector.shape_cast %10 : vector<8x128xbf16> to vector<8x1x128xbf16>
    %c0_7 = arith.constant 0 : index
    %c0_8 = arith.constant 0 : index
    %c0_9 = arith.constant 0 : index
    %12 = vector.load %arg4[%c0_7, %c0_8, %c0_9] : memref<8x2x128xbf16, #tpu.memory_space<vmem>>, vector<8x1x128xbf16>
    tpu.vector_store %arg4[%c0_7, %c0_8, %c0_9], %11 {strides = array<i32>} : memref<8x2x128xbf16, #tpu.memory_space<vmem>>, vector<8x1x128xbf16>,
    %c1 = arith.constant 1 : index
    %c0_10 = arith.constant 0 : index
    %c0_11 = arith.constant 0 : index
    %13 = vector.load %arg1[%c1, %c0_10, %c0_11] : memref<2x8x1024xf32, #tpu.memory_space<vmem>>, vector<1x8x1024xf32>
    %14 = vector.shape_cast %13 : vector<1x8x1024xf32> to vector<8x1024xf32>
    %15 = arith.truncf %14 : vector<8x1024xf32> to vector<8x1024xbf16>
    %c0_12 = arith.constant 0 : index
    %c0_13 = arith.constant 0 : index
    %16 = vector.load %arg2[%c0_12, %c0_13] : memref<1024x128xbf16, #tpu.memory_space<vmem>>, vector<1024x128xbf16>
    %cst_14 = arith.constant dense<0.000000e+00> : vector<8x128xf32>
    %17 = tpu.matmul %15, %16, %cst_14 {dimension_numbers = #tpu.dot_dimension_numbers<[1], [0], [0], [1], [0, 0, 1, 1], [], []>} : vector<8x1024xbf16>, vector<1024x128xbf16>, vector<8x128xf32> -> vector<8x128xf32>
    %c0_15 = arith.constant 0 : index
    %c0_16 = arith.constant 0 : index
    %18 = vector.load %arg3[%c0_15, %c0_16] : memref<1x128xf32, #tpu.memory_space<vmem>>, vector<1x128xf32>
    %19 = vector.broadcast %18 : vector<1x128xf32> to vector<8x128xf32>
    %20 = arith.addf %17, %19 : vector<8x128xf32>
    %cst_17 = arith.constant 0.000000e+00 : f32
    %21 = vector.broadcast %cst_17 : f32 to vector<8x128xf32>
    %22 = arith.maximumf %20, %21 : vector<8x128xf32>
    %23 = arith.truncf %22 : vector<8x128xf32> to vector<8x128xbf16>
    %24 = vector.shape_cast %23 : vector<8x128xbf16> to vector<8x1x128xbf16>
    %c0_18 = arith.constant 0 : index
    %c1_19 = arith.constant 1 : index
    %c0_20 = arith.constant 0 : index
    %25 = vector.load %arg4[%c0_18, %c1_19, %c0_20] : memref<8x2x128xbf16, #tpu.memory_space<vmem>>, vector<8x1x128xbf16>
    tpu.vector_store %arg4[%c0_18, %c1_19, %c0_20], %24 {strides = array<i32>} : memref<8x2x128xbf16, #tpu.memory_space<vmem>>, vector<8x1x128xbf16>,
    return
  }
  func.func @transform_0(%arg0: i32) -> (i32, i32, i32) {
    %c0_i32 = arith.constant 0 : i32
    %c0_i32_0 = arith.constant 0 : i32
    %c0_i32_1 = arith.constant 0 : i32
    return %c0_i32, %arg0, %c0_i32_0 : i32, i32, i32
  }
  func.func @transform_1(%arg0: i32) -> (i32, i32) {
    %c0_i32 = arith.constant 0 : i32
    %c0_i32_0 = arith.constant 0 : i32
    %c0_i32_1 = arith.constant 0 : i32
    return %c0_i32, %c0_i32_0 : i32, i32
  }
  func.func @transform_2(%arg0: i32) -> (i32, i32) {
    %c0_i32 = arith.constant 0 : i32
    %c0_i32_0 = arith.constant 0 : i32
    %c0_i32_1 = arith.constant 0 : i32
    return %c0_i32, %c0_i32_0 : i32, i32
  }
  func.func @transform_3(%arg0: i32) -> (i32, i32, i32) {
    %c0_i32 = arith.constant 0 : i32
    %c0_i32_0 = arith.constant 0 : i32
    %c0_i32_1 = arith.constant 0 : i32
    return %arg0, %c0_i32, %c0_i32_0 : i32, i32, i32
  }
}

module attributes {stable_mosaic.version = 11 : i64} {
  func.func @_lstm_head_kernel(%arg0: i32, %arg1: memref<8x2x128xbf16, #tpu.memory_space<vmem>>, %arg2: memref<256x512xbf16, #tpu.memory_space<vmem>>, %arg3: memref<1x512xf32, #tpu.memory_space<vmem>>, %arg4: memref<256x512xbf16, #tpu.memory_space<vmem>>, %arg5: memref<1x512xf32, #tpu.memory_space<vmem>>, %arg6: memref<128x2xf32, #tpu.memory_space<vmem>>, %arg7: memref<1x2xf32, #tpu.memory_space<vmem>>, %arg8: memref<2x2x128xf32, #tpu.memory_space<vmem>>, %arg9: memref<2x2x128xf32, #tpu.memory_space<vmem>>, %arg10: memref<2x8x2xf32, #tpu.memory_space<vmem>>, %arg11: memref<2x2x128xf32, #tpu.memory_space<vmem>>, %arg12: memref<2x2x128xf32, #tpu.memory_space<vmem>>, %arg13: memref<8x2x128xf32, #tpu.memory_space<vmem>>) attributes {dimension_semantics = [#tpu.dimension_semantics<arbitrary>], iteration_bounds = array<i64: 1>, scalar_prefetch = 0 : i64, scratch_operands = 3 : i64, tpu.core_type = #tpu.core_type<tc>, window_params = [{pipeline_mode = #tpu.pipeline_mode<synchronous>, transform_indices = @transform_0, window_bounds = array<i64: 8, 2, 128>}, {pipeline_mode = #tpu.pipeline_mode<synchronous>, transform_indices = @transform_1, window_bounds = array<i64: 256, 512>}, {pipeline_mode = #tpu.pipeline_mode<synchronous>, transform_indices = @transform_2, window_bounds = array<i64: 1, 512>}, {pipeline_mode = #tpu.pipeline_mode<synchronous>, transform_indices = @transform_3, window_bounds = array<i64: 256, 512>}, {pipeline_mode = #tpu.pipeline_mode<synchronous>, transform_indices = @transform_4, window_bounds = array<i64: 1, 512>}, {pipeline_mode = #tpu.pipeline_mode<synchronous>, transform_indices = @transform_5, window_bounds = array<i64: 128, 2>}, {pipeline_mode = #tpu.pipeline_mode<synchronous>, transform_indices = @transform_6, window_bounds = array<i64: 1, 2>}, {pipeline_mode = #tpu.pipeline_mode<synchronous>, transform_indices = @transform_7, window_bounds = array<i64: 2, 2, 128>}, {pipeline_mode = #tpu.pipeline_mode<synchronous>, transform_indices = @transform_8, window_bounds = array<i64: 2, 2, 128>}, {pipeline_mode = #tpu.pipeline_mode<synchronous>, transform_indices = @transform_9, window_bounds = array<i64: 2, 8, 2>}]} {
    %c0 = arith.constant 0 : index
    %c0_0 = arith.constant 0 : index
    %c0_1 = arith.constant 0 : index
    %0 = vector.load %arg8[%c0, %c0_0, %c0_1] : memref<2x2x128xf32, #tpu.memory_space<vmem>>, vector<2x2x128xf32>
    %c0_2 = arith.constant 0 : index
    %c0_3 = arith.constant 0 : index
    %c0_4 = arith.constant 0 : index
    %1 = vector.load %arg11[%c0_2, %c0_3, %c0_4] : memref<2x2x128xf32, #tpu.memory_space<vmem>>, vector<2x2x128xf32>
    tpu.vector_store %arg11[%c0_2, %c0_3, %c0_4], %0 {strides = array<i32>} : memref<2x2x128xf32, #tpu.memory_space<vmem>>, vector<2x2x128xf32>,
    %c0_5 = arith.constant 0 : index
    %c0_6 = arith.constant 0 : index
    %c0_7 = arith.constant 0 : index
    %2 = vector.load %arg9[%c0_5, %c0_6, %c0_7] : memref<2x2x128xf32, #tpu.memory_space<vmem>>, vector<2x2x128xf32>
    %c0_8 = arith.constant 0 : index
    %c0_9 = arith.constant 0 : index
    %c0_10 = arith.constant 0 : index
    %3 = vector.load %arg12[%c0_8, %c0_9, %c0_10] : memref<2x2x128xf32, #tpu.memory_space<vmem>>, vector<2x2x128xf32>
    tpu.vector_store %arg12[%c0_8, %c0_9, %c0_10], %2 {strides = array<i32>} : memref<2x2x128xf32, #tpu.memory_space<vmem>>, vector<2x2x128xf32>,
    %c0_i32 = arith.constant 0 : i32
    %c8_i32 = arith.constant 8 : i32
    %4 = arith.addi %c0_i32, %c8_i32 : i32
    %c1_i32 = arith.constant 1 : i32
    scf.for %arg14 = %c0_i32 to %4 step %c1_i32  : i32 {
      %c1_i32_25 = arith.constant 1 : i32
      %24 = arith.muli %arg14, %c1_i32_25 : i32
      %c0_i32_26 = arith.constant 0 : i32
      %25 = arith.addi %c0_i32_26, %24 : i32
      %26 = arith.index_cast %25 : i32 to index
      %c0_27 = arith.constant 0 : index
      %c0_28 = arith.constant 0 : index
      %27 = vector.load %arg1[%26, %c0_27, %c0_28] : memref<8x2x128xbf16, #tpu.memory_space<vmem>>, vector<1x2x128xbf16>
      %28 = vector.shape_cast %27 : vector<1x2x128xbf16> to vector<2x128xbf16>
      %c0_29 = arith.constant 0 : index
      %c0_30 = arith.constant 0 : index
      %c0_31 = arith.constant 0 : index
      %29 = vector.load %arg11[%c0_29, %c0_30, %c0_31] : memref<2x2x128xf32, #tpu.memory_space<vmem>>, vector<1x2x128xf32>
      %30 = vector.shape_cast %29 : vector<1x2x128xf32> to vector<2x128xf32>
      %c0_32 = arith.constant 0 : index
      %c0_33 = arith.constant 0 : index
      %c0_34 = arith.constant 0 : index
      %31 = vector.load %arg12[%c0_32, %c0_33, %c0_34] : memref<2x2x128xf32, #tpu.memory_space<vmem>>, vector<1x2x128xf32>
      %32 = vector.shape_cast %31 : vector<1x2x128xf32> to vector<2x128xf32>
      %33 = arith.truncf %30 : vector<2x128xf32> to vector<2x128xbf16>
      %34 = tpu.concatenate %28, %33 in 1 : vector<2x128xbf16>, vector<2x128xbf16> -> vector<2x256xbf16>
      %c0_35 = arith.constant 0 : index
      %c0_36 = arith.constant 0 : index
      %35 = vector.load %arg2[%c0_35, %c0_36] : memref<256x512xbf16, #tpu.memory_space<vmem>>, vector<256x512xbf16>
      %cst_37 = arith.constant dense<0.000000e+00> : vector<2x512xf32>
      %36 = tpu.matmul %34, %35, %cst_37 {dimension_numbers = #tpu.dot_dimension_numbers<[1], [0], [0], [1], [0, 0, 1, 1], [], []>} : vector<2x256xbf16>, vector<256x512xbf16>, vector<2x512xf32> -> vector<2x512xf32>
      %c0_38 = arith.constant 0 : index
      %c0_39 = arith.constant 0 : index
      %37 = vector.load %arg3[%c0_38, %c0_39] : memref<1x512xf32, #tpu.memory_space<vmem>>, vector<1x512xf32>
      %38 = vector.broadcast %37 : vector<1x512xf32> to vector<2x512xf32>
      %39 = arith.addf %36, %38 : vector<2x512xf32>
      %40 = vector.extract_strided_slice %39 {offsets = [0, 0], sizes = [2, 128], strides = [1, 1]} : vector<2x512xf32> to vector<2x128xf32>
      %41 = arith.negf %40 : vector<2x128xf32>
      %42 = math.exp %41 : vector<2x128xf32>
      %cst_40 = arith.constant 1.000000e+00 : f32
      %43 = vector.broadcast %cst_40 : f32 to vector<2x128xf32>
      %44 = arith.addf %43, %42 : vector<2x128xf32>
      %45 = arith.divf %43, %44 : vector<2x128xf32>
      %46 = vector.extract_strided_slice %39 {offsets = [0, 128], sizes = [2, 128], strides = [1, 1]} : vector<2x512xf32> to vector<2x128xf32>
      %47 = arith.negf %46 : vector<2x128xf32>
      %48 = math.exp %47 : vector<2x128xf32>
      %cst_41 = arith.constant 1.000000e+00 : f32
      %49 = vector.broadcast %cst_41 : f32 to vector<2x128xf32>
      %50 = arith.addf %49, %48 : vector<2x128xf32>
      %51 = arith.divf %49, %50 : vector<2x128xf32>
      %52 = vector.extract_strided_slice %39 {offsets = [0, 256], sizes = [2, 128], strides = [1, 1]} : vector<2x512xf32> to vector<2x128xf32>
      %53 = math.tanh %52 : vector<2x128xf32>
      %54 = vector.extract_strided_slice %39 {offsets = [0, 384], sizes = [2, 128], strides = [1, 1]} : vector<2x512xf32> to vector<2x128xf32>
      %55 = arith.negf %54 : vector<2x128xf32>
      %56 = math.exp %55 : vector<2x128xf32>
      %cst_42 = arith.constant 1.000000e+00 : f32
      %57 = vector.broadcast %cst_42 : f32 to vector<2x128xf32>
      %58 = arith.addf %57, %56 : vector<2x128xf32>
      %59 = arith.divf %57, %58 : vector<2x128xf32>
      %60 = arith.mulf %51, %32 : vector<2x128xf32>
      %61 = arith.mulf %45, %53 : vector<2x128xf32>
      %62 = arith.addf %60, %61 : vector<2x128xf32>
      %63 = math.tanh %62 : vector<2x128xf32>
      %64 = arith.mulf %59, %63 : vector<2x128xf32>
      %c0_43 = arith.constant 0 : index
      %c0_44 = arith.constant 0 : index
      %c0_45 = arith.constant 0 : index
      %65 = vector.load %arg11[%c0_43, %c0_44, %c0_45] : memref<2x2x128xf32, #tpu.memory_space<vmem>>, vector<1x2x128xf32>
      %66 = vector.shape_cast %65 : vector<1x2x128xf32> to vector<2x128xf32>
      %67 = vector.shape_cast %64 : vector<2x128xf32> to vector<1x2x128xf32>
      tpu.vector_store %arg11[%c0_43, %c0_44, %c0_45], %67 {strides = array<i32>} : memref<2x2x128xf32, #tpu.memory_space<vmem>>, vector<1x2x128xf32>,
      %c0_46 = arith.constant 0 : index
      %c0_47 = arith.constant 0 : index
      %c0_48 = arith.constant 0 : index
      %68 = vector.load %arg12[%c0_46, %c0_47, %c0_48] : memref<2x2x128xf32, #tpu.memory_space<vmem>>, vector<1x2x128xf32>
      %69 = vector.shape_cast %68 : vector<1x2x128xf32> to vector<2x128xf32>
      %70 = vector.shape_cast %62 : vector<2x128xf32> to vector<1x2x128xf32>
      tpu.vector_store %arg12[%c0_46, %c0_47, %c0_48], %70 {strides = array<i32>} : memref<2x2x128xf32, #tpu.memory_space<vmem>>, vector<1x2x128xf32>,
      %71 = arith.truncf %64 : vector<2x128xf32> to vector<2x128xbf16>
      %c1_49 = arith.constant 1 : index
      %c0_50 = arith.constant 0 : index
      %c0_51 = arith.constant 0 : index
      %72 = vector.load %arg11[%c1_49, %c0_50, %c0_51] : memref<2x2x128xf32, #tpu.memory_space<vmem>>, vector<1x2x128xf32>
      %73 = vector.shape_cast %72 : vector<1x2x128xf32> to vector<2x128xf32>
      %c1_52 = arith.constant 1 : index
      %c0_53 = arith.constant 0 : index
      %c0_54 = arith.constant 0 : index
      %74 = vector.load %arg12[%c1_52, %c0_53, %c0_54] : memref<2x2x128xf32, #tpu.memory_space<vmem>>, vector<1x2x128xf32>
      %75 = vector.shape_cast %74 : vector<1x2x128xf32> to vector<2x128xf32>
      %76 = arith.truncf %73 : vector<2x128xf32> to vector<2x128xbf16>
      %77 = tpu.concatenate %71, %76 in 1 : vector<2x128xbf16>, vector<2x128xbf16> -> vector<2x256xbf16>
      %c0_55 = arith.constant 0 : index
      %c0_56 = arith.constant 0 : index
      %78 = vector.load %arg4[%c0_55, %c0_56] : memref<256x512xbf16, #tpu.memory_space<vmem>>, vector<256x512xbf16>
      %cst_57 = arith.constant dense<0.000000e+00> : vector<2x512xf32>
      %79 = tpu.matmul %77, %78, %cst_57 {dimension_numbers = #tpu.dot_dimension_numbers<[1], [0], [0], [1], [0, 0, 1, 1], [], []>} : vector<2x256xbf16>, vector<256x512xbf16>, vector<2x512xf32> -> vector<2x512xf32>
      %c0_58 = arith.constant 0 : index
      %c0_59 = arith.constant 0 : index
      %80 = vector.load %arg5[%c0_58, %c0_59] : memref<1x512xf32, #tpu.memory_space<vmem>>, vector<1x512xf32>
      %81 = vector.broadcast %80 : vector<1x512xf32> to vector<2x512xf32>
      %82 = arith.addf %79, %81 : vector<2x512xf32>
      %83 = vector.extract_strided_slice %82 {offsets = [0, 0], sizes = [2, 128], strides = [1, 1]} : vector<2x512xf32> to vector<2x128xf32>
      %84 = arith.negf %83 : vector<2x128xf32>
      %85 = math.exp %84 : vector<2x128xf32>
      %cst_60 = arith.constant 1.000000e+00 : f32
      %86 = vector.broadcast %cst_60 : f32 to vector<2x128xf32>
      %87 = arith.addf %86, %85 : vector<2x128xf32>
      %88 = arith.divf %86, %87 : vector<2x128xf32>
      %89 = vector.extract_strided_slice %82 {offsets = [0, 128], sizes = [2, 128], strides = [1, 1]} : vector<2x512xf32> to vector<2x128xf32>
      %90 = arith.negf %89 : vector<2x128xf32>
      %91 = math.exp %90 : vector<2x128xf32>
      %cst_61 = arith.constant 1.000000e+00 : f32
      %92 = vector.broadcast %cst_61 : f32 to vector<2x128xf32>
      %93 = arith.addf %92, %91 : vector<2x128xf32>
      %94 = arith.divf %92, %93 : vector<2x128xf32>
      %95 = vector.extract_strided_slice %82 {offsets = [0, 256], sizes = [2, 128], strides = [1, 1]} : vector<2x512xf32> to vector<2x128xf32>
      %96 = math.tanh %95 : vector<2x128xf32>
      %97 = vector.extract_strided_slice %82 {offsets = [0, 384], sizes = [2, 128], strides = [1, 1]} : vector<2x512xf32> to vector<2x128xf32>
      %98 = arith.negf %97 : vector<2x128xf32>
      %99 = math.exp %98 : vector<2x128xf32>
      %cst_62 = arith.constant 1.000000e+00 : f32
      %100 = vector.broadcast %cst_62 : f32 to vector<2x128xf32>
      %101 = arith.addf %100, %99 : vector<2x128xf32>
      %102 = arith.divf %100, %101 : vector<2x128xf32>
      %103 = arith.mulf %94, %75 : vector<2x128xf32>
      %104 = arith.mulf %88, %96 : vector<2x128xf32>
      %105 = arith.addf %103, %104 : vector<2x128xf32>
      %106 = math.tanh %105 : vector<2x128xf32>
      %107 = arith.mulf %102, %106 : vector<2x128xf32>
      %c1_63 = arith.constant 1 : index
      %c0_64 = arith.constant 0 : index
      %c0_65 = arith.constant 0 : index
      %108 = vector.load %arg11[%c1_63, %c0_64, %c0_65] : memref<2x2x128xf32, #tpu.memory_space<vmem>>, vector<1x2x128xf32>
      %109 = vector.shape_cast %108 : vector<1x2x128xf32> to vector<2x128xf32>
      %110 = vector.shape_cast %107 : vector<2x128xf32> to vector<1x2x128xf32>
      tpu.vector_store %arg11[%c1_63, %c0_64, %c0_65], %110 {strides = array<i32>} : memref<2x2x128xf32, #tpu.memory_space<vmem>>, vector<1x2x128xf32>,
      %c1_66 = arith.constant 1 : index
      %c0_67 = arith.constant 0 : index
      %c0_68 = arith.constant 0 : index
      %111 = vector.load %arg12[%c1_66, %c0_67, %c0_68] : memref<2x2x128xf32, #tpu.memory_space<vmem>>, vector<1x2x128xf32>
      %112 = vector.shape_cast %111 : vector<1x2x128xf32> to vector<2x128xf32>
      %113 = vector.shape_cast %105 : vector<2x128xf32> to vector<1x2x128xf32>
      tpu.vector_store %arg12[%c1_66, %c0_67, %c0_68], %113 {strides = array<i32>} : memref<2x2x128xf32, #tpu.memory_space<vmem>>, vector<1x2x128xf32>,
      %114 = arith.index_cast %25 : i32 to index
      %c0_69 = arith.constant 0 : index
      %c0_70 = arith.constant 0 : index
      %115 = vector.load %arg13[%114, %c0_69, %c0_70] : memref<8x2x128xf32, #tpu.memory_space<vmem>>, vector<1x2x128xf32>
      %116 = vector.shape_cast %115 : vector<1x2x128xf32> to vector<2x128xf32>
      %117 = vector.shape_cast %107 : vector<2x128xf32> to vector<1x2x128xf32>
      tpu.vector_store %arg13[%114, %c0_69, %c0_70], %117 {strides = array<i32>} : memref<8x2x128xf32, #tpu.memory_space<vmem>>, vector<1x2x128xf32>,
    }
    %c8_i32_11 = arith.constant 8 : i32
    %c0_12 = arith.constant 0 : index
    %c0_13 = arith.constant 0 : index
    %c0_14 = arith.constant 0 : index
    %5 = vector.load %arg13[%c0_12, %c0_13, %c0_14] : memref<8x2x128xf32, #tpu.memory_space<vmem>>, vector<8x2x128xf32>
    %c0_15 = arith.constant 0 : index
    %c0_16 = arith.constant 0 : index
    %6 = vector.load %arg6[%c0_15, %c0_16] : memref<128x2xf32, #tpu.memory_space<vmem>>, vector<128x2xf32>
    %c0_17 = arith.constant 0 : index
    %c0_18 = arith.constant 0 : index
    %7 = vector.load %arg7[%c0_17, %c0_18] : memref<1x2xf32, #tpu.memory_space<vmem>>, vector<1x2xf32>
    %8 = vector.extract_strided_slice %5 {offsets = [0, 0, 0], sizes = [8, 1, 128], strides = [1, 1, 1]} : vector<8x2x128xf32> to vector<8x1x128xf32>
    %9 = vector.shape_cast %8 : vector<8x1x128xf32> to vector<8x128xf32>
    %cst = arith.constant dense<0.000000e+00> : vector<8x2xf32>
    %10 = tpu.matmul %9, %6, %cst {dimension_numbers = #tpu.dot_dimension_numbers<[1], [0], [0], [1], [0, 0, 1, 1], [], []>} : vector<8x128xf32>, vector<128x2xf32>, vector<8x2xf32> -> vector<8x2xf32>
    %11 = vector.broadcast %7 : vector<1x2xf32> to vector<8x2xf32>
    %12 = arith.addf %10, %11 : vector<8x2xf32>
    %c0_19 = arith.constant 0 : index
    %c0_20 = arith.constant 0 : index
    %c0_21 = arith.constant 0 : index
    %13 = vector.load %arg10[%c0_19, %c0_20, %c0_21] : memref<2x8x2xf32, #tpu.memory_space<vmem>>, vector<1x8x2xf32>
    %14 = vector.shape_cast %13 : vector<1x8x2xf32> to vector<8x2xf32>
    %15 = vector.shape_cast %12 : vector<8x2xf32> to vector<1x8x2xf32>
    tpu.vector_store %arg10[%c0_19, %c0_20, %c0_21], %15 {strides = array<i32>} : memref<2x8x2xf32, #tpu.memory_space<vmem>>, vector<1x8x2xf32>,
    %16 = vector.extract_strided_slice %5 {offsets = [0, 1, 0], sizes = [8, 1, 128], strides = [1, 1, 1]} : vector<8x2x128xf32> to vector<8x1x128xf32>
    %17 = vector.shape_cast %16 : vector<8x1x128xf32> to vector<8x128xf32>
    %cst_22 = arith.constant dense<0.000000e+00> : vector<8x2xf32>
    %18 = tpu.matmul %17, %6, %cst_22 {dimension_numbers = #tpu.dot_dimension_numbers<[1], [0], [0], [1], [0, 0, 1, 1], [], []>} : vector<8x128xf32>, vector<128x2xf32>, vector<8x2xf32> -> vector<8x2xf32>
    %19 = vector.broadcast %7 : vector<1x2xf32> to vector<8x2xf32>
    %20 = arith.addf %18, %19 : vector<8x2xf32>
    %c1 = arith.constant 1 : index
    %c0_23 = arith.constant 0 : index
    %c0_24 = arith.constant 0 : index
    %21 = vector.load %arg10[%c1, %c0_23, %c0_24] : memref<2x8x2xf32, #tpu.memory_space<vmem>>, vector<1x8x2xf32>
    %22 = vector.shape_cast %21 : vector<1x8x2xf32> to vector<8x2xf32>
    %23 = vector.shape_cast %20 : vector<8x2xf32> to vector<1x8x2xf32>
    tpu.vector_store %arg10[%c1, %c0_23, %c0_24], %23 {strides = array<i32>} : memref<2x8x2xf32, #tpu.memory_space<vmem>>, vector<1x8x2xf32>,
    return
  }
  func.func @transform_0(%arg0: i32) -> (i32, i32, i32) {
    %c0_i32 = arith.constant 0 : i32
    %c0_i32_0 = arith.constant 0 : i32
    %c0_i32_1 = arith.constant 0 : i32
    %c0_i32_2 = arith.constant 0 : i32
    return %c0_i32, %c0_i32_0, %c0_i32_1 : i32, i32, i32
  }
  func.func @transform_1(%arg0: i32) -> (i32, i32) {
    %c0_i32 = arith.constant 0 : i32
    %c0_i32_0 = arith.constant 0 : i32
    %c0_i32_1 = arith.constant 0 : i32
    return %c0_i32, %c0_i32_0 : i32, i32
  }
  func.func @transform_2(%arg0: i32) -> (i32, i32) {
    %c0_i32 = arith.constant 0 : i32
    %c0_i32_0 = arith.constant 0 : i32
    %c0_i32_1 = arith.constant 0 : i32
    return %c0_i32, %c0_i32_0 : i32, i32
  }
  func.func @transform_3(%arg0: i32) -> (i32, i32) {
    %c0_i32 = arith.constant 0 : i32
    %c0_i32_0 = arith.constant 0 : i32
    %c0_i32_1 = arith.constant 0 : i32
    return %c0_i32, %c0_i32_0 : i32, i32
  }
  func.func @transform_4(%arg0: i32) -> (i32, i32) {
    %c0_i32 = arith.constant 0 : i32
    %c0_i32_0 = arith.constant 0 : i32
    %c0_i32_1 = arith.constant 0 : i32
    return %c0_i32, %c0_i32_0 : i32, i32
  }
  func.func @transform_5(%arg0: i32) -> (i32, i32) {
    %c0_i32 = arith.constant 0 : i32
    %c0_i32_0 = arith.constant 0 : i32
    %c0_i32_1 = arith.constant 0 : i32
    return %c0_i32, %c0_i32_0 : i32, i32
  }
  func.func @transform_6(%arg0: i32) -> (i32, i32) {
    %c0_i32 = arith.constant 0 : i32
    %c0_i32_0 = arith.constant 0 : i32
    %c0_i32_1 = arith.constant 0 : i32
    return %c0_i32, %c0_i32_0 : i32, i32
  }
  func.func @transform_7(%arg0: i32) -> (i32, i32, i32) {
    %c0_i32 = arith.constant 0 : i32
    %c0_i32_0 = arith.constant 0 : i32
    %c0_i32_1 = arith.constant 0 : i32
    %c0_i32_2 = arith.constant 0 : i32
    return %c0_i32, %c0_i32_0, %c0_i32_1 : i32, i32, i32
  }
  func.func @transform_8(%arg0: i32) -> (i32, i32, i32) {
    %c0_i32 = arith.constant 0 : i32
    %c0_i32_0 = arith.constant 0 : i32
    %c0_i32_1 = arith.constant 0 : i32
    %c0_i32_2 = arith.constant 0 : i32
    return %c0_i32, %c0_i32_0, %c0_i32_1 : i32, i32, i32
  }
  func.func @transform_9(%arg0: i32) -> (i32, i32, i32) {
    %c0_i32 = arith.constant 0 : i32
    %c0_i32_0 = arith.constant 0 : i32
    %c0_i32_1 = arith.constant 0 : i32
    %c0_i32_2 = arith.constant 0 : i32
    return %c0_i32, %c0_i32_0, %c0_i32_1 : i32, i32, i32
  }
}

</mosaic_0001>

<bundles_post_ra>
// kernel: si_model1_forward.3
= control target key start
LH: loop header
LB: loop body
LE: loop exit
PB: predicated region body
PF: predicated region fallthrough
CT: control target
= control target key end

     0   :  { %14 = vsyncpa [#allocation6], 0  ;;  %s2330_s0 = inlined_call_operand.vmem [shape: bf16[8,2,128], index: 0, kind: input, shape index: {}]   ;;  %s2331_s1 = inlined_call_operand.hbm [shape: bf16[256,512], index: 1, kind: input, shape index: {}]   ;;  %s2332_s2 = inlined_call_operand.vmem [shape: f32[1,512], index: 2, kind: input, shape index: {}]   ;;  %s2333_s3 = inlined_call_operand.hbm [shape: bf16[256,512], index: 3, kind: input, shape index: {}]   ;;  %s2334_s4 = inlined_call_operand.vmem [shape: f32[1,512], index: 4, kind: input, shape index: {}]   ;;  %s2335_s5 = inlined_call_operand.vmem [shape: f32[128,2], index: 5, kind: input, shape index: {}]   ;;  %s2336_s6 = inlined_call_operand.vmem [shape: f32[1,2], index: 6, kind: input, shape index: {}]   ;;  %s2337_s7 = inlined_call_operand.vmem [shape: f32[2,2,128], index: 7, kind: input, shape index: {}]   ;;  %s2338_s8 = inlined_call_operand.vmem [shape: f32[2,2,128], index: 8, kind: input, shape index: {}]   ;;  %s2339_s9 = inlined_call_operand.vmem [shape: f32[2,8,2], index: 9, kind: output, shape index: {}]  }
   0x1   :  { %s22_s11 = sshll.u32 %s2331_s1, 4  ;;  %s23_s11 = int_to_ptr.hbm [resolvable:$true] %s22_s11 }
   0x2   :  { %15 = vsyncpa [#allocation8], 0  ;;  %s2102_s12 = smov [#allocation5]   ;;  %s37_s16 = sshll.u32 %s2333_s3, 4  ;;  %s38_s16 = int_to_ptr.hbm [resolvable:$true] %s37_s16 }
   0x3   :  { %s24_s13 = sshll.u32 %s2102_s12, 4  ;;  %s2103_s17 = smov 256   ;;  %s25_s13 = int_to_ptr.vmem [resolvable:$true] %s24_s13 }
   0x4   :  { %s2104_s18 = smov 16   ;;  %s2105_s19 = smov [#allocation7]  }
   0x5   :  { %30 = dma.hbm_to_vmem [thread:$0]  %s23_s11, 8192, %s25_s13, [#allocation6], %s2103_s17, %s2103_s17, %s2104_s18  }
   0x6   :  { %s39_s20 = sshll.u32 %s2105_s19, 4  ;;  %s40_s20 = int_to_ptr.vmem [resolvable:$true] %s39_s20 }
   0x7   :  { %45 = dma.hbm_to_vmem [thread:$0]  %s38_s16, 8192, %s40_s20, [#allocation8], %s2103_s17, %s2103_s17, %s2104_s18  }
   0x8   :  { %2094 = dma.done.wait [#allocation6], 8192  }
   0x9   :  { %2095 = vsyncadd [#allocation6], 4294959104 }
   0xa   :  { %2096 = dma.done.wait [#allocation8], 8192  }
   0xb   :  { %2097 = vsyncadd [#allocation8], 4294959104  ;;  %v64_v0 = vld [vmem:[%s2337_s7] sm:$0xf]   ;;  %s2168_s3 = smov 0  }
   0xc   :  { %v68_v1 = vld [vmem:[%s2338_s8] sm:$0xf]   ;;  %66 = vst [vmem:[#allocation2] sm:$0xf] %v64_v0  }
   0xd   :  { %70 = vst [vmem:[#allocation3] sm:$0xf] %v68_v1  }
   0xe LB: > { %v1463_v2 = vld [vmem:[#allocation5 + $0xe0] sm:$0xf]  ;;  %v1899_v3 = vld [vmem:[#allocation5 + $0xec] sm:$0xf0]  ;;  %v1897_v4 = vld [vmem:[#allocation5 + $0xe4] sm:$0xf]  ;;  %s78_s24 = scalar_lea.vmem %s2330_s0, %s2100_s3  ;;  %s2100_s3 = sphi %s2168_s3, %s77_s3  }
   0xf   : > { %v1464_v5 = vor.u32 %v1899_v3, %v1463_v2  ;;  %v1465_v6 = vld [vmem:[#allocation5 + $0xf0] sm:$0xf0]  ;;  %v1929_v7 = vld [vmem:[#allocation5 + $0x1e4] sm:$0xf]  ;;  %v1591_v11 = vld [vmem:[#allocation5 + $0x1e0] sm:$0xf] }
  0x10   : > { %v1593_v8 = vld [vmem:[#allocation5 + $0x1f0] sm:$0xf0]  ;;  %v1468_v9 = vor.u32 %v1897_v4, %v1465_v6  ;;  %v1931_v12 = vld [vmem:[#allocation5 + $0x1ec] sm:$0xf0]  ;;  %v1447_v13 = vld [vmem:[#allocation5 + $0xc0] sm:$0xf] }
  0x11   : > { %v1596_v10 = vor.u32 %v1929_v7, %v1593_v8  ;;  %477 = vmatpush.bf16.msra.mxu0 %v1464_v5  ;;  %v1592_v14 = vor.u32 %v1931_v12, %v1591_v11  ;;  %v1895_v15 = vld [vmem:[#allocation5 + $0xcc] sm:$0xf0]  ;;  %v1893_v16 = vld [vmem:[#allocation5 + $0xc4] sm:$0xf]  ;;  %v1449_v17 = vld [vmem:[#allocation5 + $0xd0] sm:$0xf0] }
  0x12   : > { %503 = vmatpush.bf16.msra.mxu2 %v1468_v9  ;;  %v1448_v18 = vor.u32 %v1895_v15, %v1447_v13  ;;  %v1452_v19 = vor.u32 %v1893_v16, %v1449_v17  ;;  %v1925_v20 = vld [vmem:[#allocation5 + $0x1c4] sm:$0xf]  ;;  %v1577_v21 = vld [vmem:[#allocation5 + $0x1d0] sm:$0xf0]  ;;  %v1575_v22 = vld [vmem:[#allocation5 + $0x1c0] sm:$0xf] }
  0x13   : > { %516 = vmatpush.bf16.msra.mxu3 %v1596_v10  ;;  %490 = vmatpush.bf16.msra.mxu1 %v1592_v14  ;;  %v1580_v23 = vor.u32 %v1925_v20, %v1577_v21  ;;  %v1927_v24 = vld [vmem:[#allocation5 + $0x1cc] sm:$0xf0]  ;;  %v1431_v25 = vld [vmem:[#allocation5 + $0xa0] sm:$0xf]  ;;  %v1889_v28 = vld [vmem:[#allocation5 + $0xa4] sm:$0xf] }
  0x14   : > { %v1891_v26 = vld [vmem:[#allocation5 + $0xac] sm:$0xf0]  ;;  %v1576_v27 = vor.u32 %v1927_v24, %v1575_v22  ;;  %v1433_v29 = vld [vmem:[#allocation5 + $0xb0] sm:$0xf0]  ;;  %v1921_v30 = vld [vmem:[#allocation5 + $0x1a4] sm:$0xf] }
  0x15   : > { %478 = vmatpush.bf16.msra.mxu0 %v1448_v18  ;;  %v1432_v31 = vor.u32 %v1891_v26, %v1431_v25  ;;  %v1561_v32 = vld [vmem:[#allocation5 + $0x1b0] sm:$0xf0]  ;;  %v1559_v33 = vld [vmem:[#allocation5 + $0x1a0] sm:$0xf]  ;;  %v1923_v34 = vld [vmem:[#allocation5 + $0x1ac] sm:$0xf0]  ;;  %v1436_v35 = vor.u32 %v1889_v28, %v1433_v29 }
  0x16   : > { %504 = vmatpush.bf16.msra.mxu2 %v1452_v19  ;;  %v1564_v36 = vor.u32 %v1921_v30, %v1561_v32  ;;  %v1415_v37 = vld [vmem:[#allocation5 + $0x80] sm:$0xf]  ;;  %v1887_v38 = vld [vmem:[#allocation5 + $0x8c] sm:$0xf0]  ;;  %v1885_v39 = vld [vmem:[#allocation5 + $0x84] sm:$0xf]  ;;  %v1560_v40 = vor.u32 %v1923_v34, %v1559_v33 }
  0x17   : > { %517 = vmatpush.bf16.msra.mxu3 %v1580_v23  ;;  %491 = vmatpush.bf16.msra.mxu1 %v1576_v27  ;;  %v1417_v41 = vld [vmem:[#allocation5 + $0x90] sm:$0xf0]  ;;  %v1917_v42 = vld [vmem:[#allocation5 + $0x184] sm:$0xf]  ;;  %v1543_v44 = vld [vmem:[#allocation5 + $0x180] sm:$0xf]  ;;  %v1416_v46 = vor.u32 %v1887_v38, %v1415_v37 }
  0x18   : > { %v1545_v43 = vld [vmem:[#allocation5 + $0x190] sm:$0xf0]  ;;  %v1919_v45 = vld [vmem:[#allocation5 + $0x18c] sm:$0xf0]  ;;  %v1420_v47 = vor.u32 %v1885_v39, %v1417_v41  ;;  %v1399_v49 = vld [vmem:[#allocation5 + $0x60] sm:$0xf] }
  0x19   : > { %479 = vmatpush.bf16.msra.mxu0 %v1432_v31  ;;  %v1548_v48 = vor.u32 %v1917_v42, %v1545_v43  ;;  %v1883_v50 = vld [vmem:[#allocation5 + $0x6c] sm:$0xf0]  ;;  %v1881_v51 = vld [vmem:[#allocation5 + $0x64] sm:$0xf]  ;;  %v1544_v52 = vor.u32 %v1919_v45, %v1543_v44  ;;  %v1401_v53 = vld [vmem:[#allocation5 + $0x70] sm:$0xf0] }
  0x1a   : > { %505 = vmatpush.bf16.msra.mxu2 %v1436_v35  ;;  %v1913_v54 = vld [vmem:[#allocation5 + $0x164] sm:$0xf]  ;;  %v1529_v55 = vld [vmem:[#allocation5 + $0x170] sm:$0xf0]  ;;  %v1527_v56 = vld [vmem:[#allocation5 + $0x160] sm:$0xf]  ;;  %v1400_v58 = vor.u32 %v1883_v50, %v1399_v49  ;;  %v1404_v59 = vor.u32 %v1881_v51, %v1401_v53 }
  0x1b   : > { %518 = vmatpush.bf16.msra.mxu3 %v1564_v36  ;;  %492 = vmatpush.bf16.msra.mxu1 %v1560_v40  ;;  %v1915_v57 = vld [vmem:[#allocation5 + $0x16c] sm:$0xf0]  ;;  %v1532_v60 = vor.u32 %v1913_v54, %v1529_v55  ;;  %v1383_v61 = vld [vmem:[#allocation5 + $0x40] sm:$0xf]  ;;  %v1877_v63 = vld [vmem:[#allocation5 + $0x44] sm:$0xf] }
  0x1c   : > { %v1879_v62 = vld [vmem:[#allocation5 + $0x4c] sm:$0xf0]  ;;  %v1528_v0 = vor.u32 %v1915_v57, %v1527_v56  ;;  %v1385_v1 = vld [vmem:[#allocation5 + $0x50] sm:$0xf0]  ;;  %v1909_v2 = vld [vmem:[#allocation5 + $0x144] sm:$0xf] }
  0x1d   : > { %480 = vmatpush.bf16.msra.mxu0 %v1416_v46  ;;  %v1513_v3 = vld [vmem:[#allocation5 + $0x150] sm:$0xf0]  ;;  %v1511_v4 = vld [vmem:[#allocation5 + $0x140] sm:$0xf]  ;;  %v1911_v5 = vld [vmem:[#allocation5 + $0x14c] sm:$0xf0]  ;;  %v1384_v6 = vor.u32 %v1879_v62, %v1383_v61  ;;  %v1388_v7 = vor.u32 %v1877_v63, %v1385_v1 }
  0x1e   : > { %506 = vmatpush.bf16.msra.mxu2 %v1420_v47  ;;  %v1516_v8 = vor.u32 %v1909_v2, %v1513_v3  ;;  %v1367_v9 = vld [vmem:[#allocation5 + $0x20] sm:$0xf]  ;;  %v1875_v10 = vld [vmem:[#allocation5 + $0x2c] sm:$0xf0]  ;;  %v1873_v11 = vld [vmem:[#allocation5 + $0x24] sm:$0xf]  ;;  %v1512_v12 = vor.u32 %v1911_v5, %v1511_v4 }
  0x1f   : > { %519 = vmatpush.bf16.msra.mxu3 %v1548_v48  ;;  %493 = vmatpush.bf16.msra.mxu1 %v1544_v52  ;;  %v1369_v13 = vld [vmem:[#allocation5 + $0x30] sm:$0xf0]  ;;  %v1905_v14 = vld [vmem:[#allocation5 + $0x124] sm:$0xf]  ;;  %v1495_v16 = vld [vmem:[#allocation5 + $0x120] sm:$0xf]  ;;  %v1368_v18 = vor.u32 %v1875_v10, %v1367_v9 }
  0x20   : > { %v1497_v15 = vld [vmem:[#allocation5 + $0x130] sm:$0xf0]  ;;  %v1907_v17 = vld [vmem:[#allocation5 + $0x12c] sm:$0xf0]  ;;  %v1351_v19 = vld [vmem:[#allocation5] sm:$0xf]  ;;  %v1372_v21 = vor.u32 %v1873_v11, %v1369_v13 }
  0x21   : > { %481 = vmatpush.bf16.msra.mxu0 %v1400_v58  ;;  %v1871_v20 = vld [vmem:[#allocation5 + $0xc] sm:$0xf0]  ;;  %v1500_v22 = vor.u32 %v1905_v14, %v1497_v15  ;;  %v1869_v23 = vld [vmem:[#allocation5 + $0x4] sm:$0xf]  ;;  %v1353_v24 = vld [vmem:[#allocation5 + $0x10] sm:$0xf0]  ;;  %v1496_v26 = vor.u32 %v1907_v17, %v1495_v16 }
  0x22   : > { %507 = vmatpush.bf16.msra.mxu2 %v1404_v59  ;;  %v1901_v25 = vld [vmem:[#allocation5 + $0x104] sm:$0xf]  ;;  %v1481_v27 = vld [vmem:[#allocation5 + $0x110] sm:$0xf0]  ;;  %v1471_v28 = vld [vmem:[#allocation5 + $0xe8] sm:$0xf]  ;;  %v1352_v33 = vor.u32 %v1871_v20, %v1351_v19  ;;  %v1356_v37 = vor.u32 %v1869_v23, %v1353_v24 }
  0x23   : > { %520 = vmatpush.bf16.msra.mxu3 %v1532_v60  ;;  %494 = vmatpush.bf16.msra.mxu1 %v1528_v0  ;;  %v1900_v29 = vld [vmem:[#allocation5 + $0xf4] sm:$0xf0]  ;;  %v1898_v30 = vld [vmem:[#allocation5 + $0xec] sm:$0xf]  ;;  %v1473_v31 = vld [vmem:[#allocation5 + $0xf8] sm:$0xf0]  ;;  %v1484_v38 = vor.u32 %v1901_v25, %v1481_v27 }
  0x24   : > { %v1930_v32 = vld [vmem:[#allocation5 + $0x1ec] sm:$0xf]  ;;  %v1601_v34 = vld [vmem:[#allocation5 + $0x1f8] sm:$0xf0]  ;;  %v1479_v35 = vld [vmem:[#allocation5 + $0x100] sm:$0xf]  ;;  %v1472_v41 = vor.u32 %v1900_v29, %v1471_v28  ;;  %v1476_v42 = vor.u32 %v1898_v30, %v1473_v31 }
  0x25   : > { %482 = vmatpush.bf16.msra.mxu0 %v1384_v6  ;;  %v1903_v36 = vld [vmem:[#allocation5 + $0x10c] sm:$0xf0]  ;;  %v1599_v39 = vld [vmem:[#allocation5 + $0x1e8] sm:$0xf]  ;;  %v1932_v40 = vld [vmem:[#allocation5 + $0x1f4] sm:$0xf0]  ;;  %v1604_v45 = vor.u32 %v1930_v32, %v1601_v34 }
  0x26   : > { %508 = vmatpush.bf16.msra.mxu2 %v1388_v7  ;;  %v80_v43 = vld [vmem:[#allocation2] sm:$0x3]  ;;  %v1480_v46 = vor.u32 %v1903_v36, %v1479_v35  ;;  %v1896_v47 = vld [vmem:[#allocation5 + $0xd4] sm:$0xf0]  ;;  %v1894_v48 = vld [vmem:[#allocation5 + $0xcc] sm:$0xf]  ;;  %v1600_v50 = vor.u32 %v1932_v40, %v1599_v39 }
  0x27   : > { %521 = vmatpush.bf16.msra.mxu3 %v1516_v8  ;;  %495 = vmatpush.bf16.msra.mxu1 %v1512_v12  ;;  %v1455_v44 = vld [vmem:[#allocation5 + $0xc8] sm:$0xf]  ;;  %v1457_v49 = vld [vmem:[#allocation5 + $0xd8] sm:$0xf0]  ;;  %v1926_v51 = vld [vmem:[#allocation5 + $0x1cc] sm:$0xf]  ;;  %v2179_v54 = vpack.c.bf16 %v80_v43, %v80_v43 }
  0x28   : > { %v1585_v52 = vld [vmem:[#allocation5 + $0x1d8] sm:$0xf0]  ;;  %v2177_v53 = vld [vmem:[%s78_s24] sm:$0x1]  ;;  %v1928_v56 = vld [vmem:[#allocation5 + $0x1d4] sm:$0xf0]  ;;  %v1456_v57 = vor.u32 %v1896_v47, %v1455_v44  ;;  %v1460_v58 = vor.u32 %v1894_v48, %v1457_v49 }
  0x29   : > { %483 = vmatpush.bf16.msra.mxu0 %v1368_v18  ;;  %v1583_v55 = vld [vmem:[#allocation5 + $0x1c8] sm:$0xf]  ;;  %v1588_v60 = vor.u32 %v1926_v51, %v1585_v52  ;;  %v1892_v61 = vld [vmem:[#allocation5 + $0xb4] sm:$0xf0]  ;;  %v1890_v62 = vld [vmem:[#allocation5 + $0xac] sm:$0xf] }
  0x2a   : > { %509 = vmatpush.bf16.msra.mxu2 %v1372_v21  ;;  %v1439_v59 = vld [vmem:[#allocation5 + $0xa8] sm:$0xf]  ;;  %v1441_v63 = vld [vmem:[#allocation5 + $0xb8] sm:$0xf0]  ;;  %v1584_v0 = vor.u32 %v1928_v56, %v1583_v55  ;;  %v1922_v1 = vld [vmem:[#allocation5 + $0x1ac] sm:$0xf] }
  0x2b   : > { %522 = vmatpush.bf16.msra.mxu3 %v1500_v22  ;;  %496 = vmatpush.bf16.msra.mxu1 %v1496_v26  ;;  %v1569_v2 = vld [vmem:[#allocation5 + $0x1b8] sm:$0xf0]  ;;  %v1567_v3 = vld [vmem:[#allocation5 + $0x1a8] sm:$0xf]  ;;  %v1924_v4 = vld [vmem:[#allocation5 + $0x1b4] sm:$0xf0]  ;;  %v1440_v5 = vor.u32 %v1892_v61, %v1439_v59  ;;  %v1444_v6 = vor.u32 %v1890_v62, %v1441_v63 }
  0x2c   : > { %v1423_v7 = vld [vmem:[#allocation5 + $0x88] sm:$0xf]  ;;  %v1572_v8 = vor.u32 %v1922_v1, %v1569_v2  ;;  %v1888_v9 = vld [vmem:[#allocation5 + $0x94] sm:$0xf0]  ;;  %v1886_v10 = vld [vmem:[#allocation5 + $0x8c] sm:$0xf]  ;;  %v1568_v12 = vor.u32 %v1924_v4, %v1567_v3 }
  0x2d   : > { %484 = vmatpush.bf16.msra.mxu0 %v1352_v33  ;;  %v1425_v11 = vld [vmem:[#allocation5 + $0x98] sm:$0xf0]  ;;  %v1918_v13 = vld [vmem:[#allocation5 + $0x18c] sm:$0xf]  ;;  %v1551_v15 = vld [vmem:[#allocation5 + $0x188] sm:$0xf]  ;;  %v1424_v17 = vor.u32 %v1888_v9, %v1423_v7 }
  0x2e   : > { %510 = vmatpush.bf16.msra.mxu2 %v1356_v37  ;;  %v1553_v14 = vld [vmem:[#allocation5 + $0x198] sm:$0xf0]  ;;  %v1920_v16 = vld [vmem:[#allocation5 + $0x194] sm:$0xf0]  ;;  %v1428_v18 = vor.u32 %v1886_v10, %v1425_v11  ;;  %v1407_v19 = vld [vmem:[#allocation5 + $0x68] sm:$0xf] }
  0x2f   : > { %523 = vmatpush.bf16.msra.mxu3 %v1484_v38  ;;  %497 = vmatpush.bf16.msra.mxu1 %v1480_v46  ;;  %v1556_v20 = vor.u32 %v1918_v13, %v1553_v14  ;;  %v1884_v21 = vld [vmem:[#allocation5 + $0x74] sm:$0xf0]  ;;  %v1882_v22 = vld [vmem:[#allocation5 + $0x6c] sm:$0xf]  ;;  %v1409_v23 = vld [vmem:[#allocation5 + $0x78] sm:$0xf0]  ;;  %v1552_v24 = vor.u32 %v1920_v16, %v1551_v15 }
  0x30   : > { %485 = vmatmul.bf16.vlgmr.msra.gmra.mxu0 %v2177_v53  ;;  %v1914_v25 = vld [vmem:[#allocation5 + $0x16c] sm:$0xf]  ;;  %v1537_v26 = vld [vmem:[#allocation5 + $0x178] sm:$0xf0]  ;;  %v1535_v27 = vld [vmem:[#allocation5 + $0x168] sm:$0xf]  ;;  %v1408_v29 = vor.u32 %v1884_v21, %v1407_v19  ;;  %v1412_v30 = vor.u32 %v1882_v22, %v1409_v23 }
  0x31   : > { %529 = vmatpush.bf16.msrb.mxu0 %v1472_v41  ;;  %511 = vmatmul.bf16.vlgmr.msra.gmra.mxu2 %v2177_v53  ;;  %v1916_v28 = vld [vmem:[#allocation5 + $0x174] sm:$0xf0]  ;;  %v1391_v31 = vld [vmem:[#allocation5 + $0x48] sm:$0xf]  ;;  %v1540_v32 = vor.u32 %v1914_v25, %v1537_v26  ;;  %v1878_v34 = vld [vmem:[#allocation5 + $0x4c] sm:$0xf] }
  0x32   : > { %555 = vmatpush.bf16.msrb.mxu2 %v1476_v42  ;;  %524 = vmatmul.bf16.vlgmr.msra.gmra.mxu3 %v2179_v54  ;;  %v1880_v33 = vld [vmem:[#allocation5 + $0x54] sm:$0xf0]  ;;  %v1393_v35 = vld [vmem:[#allocation5 + $0x58] sm:$0xf0]  ;;  %v1536_v36 = vor.u32 %v1916_v28, %v1535_v27  ;;  %v1910_v37 = vld [vmem:[#allocation5 + $0x14c] sm:$0xf] }
  0x33   : > { %568 = vmatpush.bf16.msrb.mxu3 %v1604_v45  ;;  %542 = vmatpush.bf16.msrb.mxu1 %v1600_v50  ;;  %v1521_v38 = vld [vmem:[#allocation5 + $0x158] sm:$0xf0]  ;;  %v1519_v39 = vld [vmem:[#allocation5 + $0x148] sm:$0xf]  ;;  %v1912_v40 = vld [vmem:[#allocation5 + $0x154] sm:$0xf0]  ;;  %v1392_v41 = vor.u32 %v1880_v33, %v1391_v31  ;;  %v1396_v42 = vor.u32 %v1878_v34, %v1393_v35 }
  0x34   : > { %498 = vmatmul.bf16.vlgmr.msra.gmra.mxu1 %v2179_v54  ;;  %v1375_v43 = vld [vmem:[#allocation5 + $0x28] sm:$0xf]  ;;  %v1524_v44 = vor.u32 %v1910_v37, %v1521_v38  ;;  %v1876_v45 = vld [vmem:[#allocation5 + $0x34] sm:$0xf0]  ;;  %v1874_v46 = vld [vmem:[#allocation5 + $0x2c] sm:$0xf]  ;;  %v1520_v48 = vor.u32 %v1912_v40, %v1519_v39 }
  0x35   : > { %530 = vmatpush.bf16.msrb.mxu0 %v1456_v57  ;;  %v1377_v47 = vld [vmem:[#allocation5 + $0x38] sm:$0xf0]  ;;  %v1906_v49 = vld [vmem:[#allocation5 + $0x12c] sm:$0xf]  ;;  %v1503_v51 = vld [vmem:[#allocation5 + $0x128] sm:$0xf]  ;;  %v1376_v55 = vor.u32 %v1876_v45, %v1375_v43 }
  0x36   : > { %556 = vmatpush.bf16.msrb.mxu2 %v1460_v58  ;;  %v1505_v50 = vld [vmem:[#allocation5 + $0x138] sm:$0xf0]  ;;  %v1908_v52 = vld [vmem:[#allocation5 + $0x134] sm:$0xf0]  ;;  %v1380_v56 = vor.u32 %v1874_v46, %v1377_v47  ;;  %v1359_v57 = vld [vmem:[#allocation5 + $0x8] sm:$0xf] }
  0x37   : > { %569 = vmatpush.bf16.msrb.mxu3 %v1588_v60  ;;  %543 = vmatpush.bf16.msrb.mxu1 %v1584_v0  ;;  %v1508_v58 = vor.u32 %v1906_v49, %v1505_v50  ;;  %v1872_v59 = vld [vmem:[#allocation5 + $0x14] sm:$0xf0]  ;;  %v1870_v60 = vld [vmem:[#allocation5 + $0xc] sm:$0xf]  ;;  %v1361_v61 = vld [vmem:[#allocation5 + $0x18] sm:$0xf0]  ;;  %v1504_v62 = vor.u32 %v1908_v52, %v1503_v51 }
  0x38   : > { %v1902_v63 = vld [vmem:[#allocation5 + $0x10c] sm:$0xf]  ;;  %v1489_v0 = vld [vmem:[#allocation5 + $0x118] sm:$0xf0]  ;;  %v1487_v1 = vld [vmem:[#allocation5 + $0x108] sm:$0xf]  ;;  %v1360_v3 = vor.u32 %v1872_v59, %v1359_v57  ;;  %v1364_v4 = vor.u32 %v1870_v60, %v1361_v61 }
  0x39   : > { %531 = vmatpush.bf16.msrb.mxu0 %v1440_v5  ;;  %v1904_v2 = vld [vmem:[#allocation5 + $0x114] sm:$0xf0]  ;;  %v1492_v5 = vor.u32 %v1902_v63, %v1489_v0  ;;  %v1993_v7 = vld [vmem:[#allocation7 + $0x1e4] sm:$0xf]  ;;  %v1836_v11 = vld [vmem:[#allocation7 + $0x1d0] sm:$0xf0] }
  0x3a   : > { %557 = vmatpush.bf16.msrb.mxu2 %v1444_v6  ;;  %v1488_v6 = vor.u32 %v1904_v2, %v1487_v1  ;;  %v1989_v10 = vld [vmem:[#allocation7 + $0x1c4] sm:$0xf]  ;;  %v1722_v13 = vld [vmem:[#allocation7 + $0xe0] sm:$0xf]  ;;  %v1963_v14 = vld [vmem:[#allocation7 + $0xec] sm:$0xf0] }
  0x3b   : > { %570 = vmatpush.bf16.msrb.mxu3 %v1572_v8  ;;  %544 = vmatpush.bf16.msrb.mxu1 %v1568_v12  ;;  %v1852_v8 = vld [vmem:[#allocation7 + $0x1f0] sm:$0xf0]  ;;  %v1839_v12 = vor.u32 %v1989_v10, %v1836_v11  ;;  %v1961_v15 = vld [vmem:[#allocation7 + $0xe4] sm:$0xf]  ;;  %v2192_v16 = vld [vmem:[%s2332_s2] sm:$0xf] }
  0x3c   : > { %v1855_v9 = vor.u32 %v1993_v7, %v1852_v8  ;;  %v1995_v19 = vld [vmem:[#allocation7 + $0x1ec] sm:$0xf0]  ;;  %v149_v21 = vperm.slane %v2192_v16, 0  ;;  %v1820_v23 = vld [vmem:[#allocation7 + $0x1b0] sm:$0xf0]  ;;  %s1867_s29 = sshll.u32 %s2100_s3, 1 }
  0x3d   : > { %532 = vmatpush.bf16.msrb.mxu0 %v1424_v17  ;;  %v1724_v17 = vld [vmem:[#allocation7 + $0xf0] sm:$0xf0]  ;;  %v1706_v25 = vld [vmem:[#allocation7 + $0xc0] sm:$0xf]  ;;  %v1959_v26 = vld [vmem:[#allocation7 + $0xcc] sm:$0xf0] }
  0x3e   : > { %558 = vmatpush.bf16.msrb.mxu2 %v1428_v18  ;;  %v1727_v18 = vor.u32 %v1961_v15, %v1724_v17  ;;  %v1957_v27 = vld [vmem:[#allocation7 + $0xc4] sm:$0xf]  ;;  %v1707_v28 = vor.u32 %v1959_v26, %v1706_v25  ;;  %v1834_v31 = vld [vmem:[#allocation7 + $0x1c0] sm:$0xf]  ;;  %v1955_v40 = vld [vmem:[#allocation7 + $0xac] sm:$0xf0] }
  0x3f   : > { %571 = vmatpush.bf16.msrb.mxu3 %v1556_v20  ;;  %545 = vmatpush.bf16.msrb.mxu1 %v1552_v24  ;;  %v1985_v20 = vld [vmem:[#allocation7 + $0x1a4] sm:$0xf]  ;;  %v1690_v39 = vld [vmem:[#allocation7 + $0xa0] sm:$0xf]  ;;  %v1692_v45 = vld [vmem:[#allocation7 + $0xb0] sm:$0xf0] }
  0x40   : > { %v1823_v24 = vor.u32 %v1985_v20, %v1820_v23  ;;  %v1981_v33 = vld [vmem:[#allocation7 + $0x184] sm:$0xf]  ;;  %v1987_v49 = vld [vmem:[#allocation7 + $0x1ac] sm:$0xf0]  ;;  %v1788_v52 = vld [vmem:[#allocation7 + $0x170] sm:$0xf0] }
  0x41   : > { %533 = vmatpush.bf16.msrb.mxu0 %v1408_v29  ;;  %v1708_v29 = vld [vmem:[#allocation7 + $0xd0] sm:$0xf0]  ;;  %v1977_v50 = vld [vmem:[#allocation7 + $0x164] sm:$0xf]  ;;  %v1951_v59 = vld [vmem:[#allocation7 + $0x8c] sm:$0xf0] }
  0x42   : > { %559 = vmatpush.bf16.msrb.mxu2 %v1412_v30  ;;  %v1711_v30 = vor.u32 %v1957_v27, %v1708_v29  ;;  %v1791_v57 = vor.u32 %v1977_v50, %v1788_v52  ;;  %v1949_v63 = vld [vmem:[#allocation7 + $0x84] sm:$0xf]  ;;  %v1676_v0 = vld [vmem:[#allocation7 + $0x90] sm:$0xf0]  ;;  %v1802_v2 = vld [vmem:[#allocation7 + $0x180] sm:$0xf] }
  0x43   : > { %572 = vmatpush.bf16.msrb.mxu3 %v1540_v32  ;;  %546 = vmatpush.bf16.msrb.mxu1 %v1536_v36  ;;  %v1991_v32 = vld [vmem:[#allocation7 + $0x1cc] sm:$0xf0]  ;;  %v1804_v36 = vld [vmem:[#allocation7 + $0x190] sm:$0xf0]  ;;  %v1679_v1 = vor.u32 %v1949_v63, %v1676_v0  ;;  %v1658_v10 = vld [vmem:[#allocation7 + $0x60] sm:$0xf] }
  0x44   : > { %v1835_v35 = vor.u32 %v1991_v32, %v1834_v31  ;;  %v1807_v38 = vor.u32 %v1981_v33, %v1804_v36  ;;  %v1772_v8 = vld [vmem:[#allocation7 + $0x150] sm:$0xf0]  ;;  %v1947_v11 = vld [vmem:[#allocation7 + $0x6c] sm:$0xf0]  ;;  %v1642_v25 = vld [vmem:[#allocation7 + $0x40] sm:$0xf] }
  0x45   : > { %534 = vmatpush.bf16.msrb.mxu0 %v1392_v41  ;;  %v1953_v41 = vld [vmem:[#allocation7 + $0xa4] sm:$0xf]  ;;  %v1659_v15 = vor.u32 %v1947_v11, %v1658_v10  ;;  %v1943_v26 = vld [vmem:[#allocation7 + $0x4c] sm:$0xf0]  ;;  %v1644_v31 = vld [vmem:[#allocation7 + $0x50] sm:$0xf0] }
  0x46   : > { %560 = vmatpush.bf16.msrb.mxu2 %v1396_v42  ;;  %v150_v42 = vperm.slane %v2192_v16, 1  ;;  %v1695_v47 = vor.u32 %v1953_v41, %v1692_v45  ;;  %v1941_v27 = vld [vmem:[#allocation7 + $0x44] sm:$0xf]  ;;  %v1770_v33 = vld [vmem:[#allocation7 + $0x140] sm:$0xf]  ;;  %s1216_s30 = scalar_lea.vmem [#allocation4], %s1867_s29 }
  0x47   : > { %573 = vmatpush.bf16.msrb.mxu3 %v1524_v44  ;;  %547 = vmatpush.bf16.msrb.mxu1 %v1520_v48  ;;  %v1691_v44 = vor.u32 %v1955_v40, %v1690_v39  ;;  %v1818_v48 = vld [vmem:[#allocation7 + $0x1a0] sm:$0xf]  ;;  %v1647_v32 = vor.u32 %v1941_v27, %v1644_v31  ;;  %v1740_v36 = vld [vmem:[#allocation7 + $0x110] sm:$0xf0]  ;;  %v1994_v39 = vld [vmem:[#allocation7 + $0x1ec] sm:$0xf] }
  0x48   : > { %v1819_v51 = vor.u32 %v1987_v49, %v1818_v48  ;;  %v1860_v40 = vld [vmem:[#allocation7 + $0x1f8] sm:$0xf0]  ;;  %v1626_v41 = vld [vmem:[#allocation7 + $0x20] sm:$0xf]  ;;  %v1937_v45 = vld [vmem:[#allocation7 + $0x24] sm:$0xf] }
  0x49   : > { %535 = vmatpush.bf16.msrb.mxu0 %v1376_v55  ;;  %v1628_v48 = vld [vmem:[#allocation7 + $0x30] sm:$0xf0]  ;;  %v1754_v49 = vld [vmem:[#allocation7 + $0x120] sm:$0xf]  ;;  %v1990_v52 = vld [vmem:[#allocation7 + $0x1cc] sm:$0xf] }
  0x4a   : > { %561 = vmatpush.bf16.msrb.mxu2 %v1380_v56  ;;  %v1631_v50 = vor.u32 %v1937_v45, %v1628_v48  ;;  %v1933_v63 = vld [vmem:[#allocation7 + $0x4] sm:$0xf]  ;;  %v1612_v0 = vld [vmem:[#allocation7 + $0x10] sm:$0xf0]  ;;  %v1962_v10 = vld [vmem:[#allocation7 + $0xec] sm:$0xf] }
  0x4b   : > { %574 = vmatpush.bf16.msrb.mxu3 %v1508_v58  ;;  %548 = vmatpush.bf16.msrb.mxu1 %v1504_v62  ;;  %v1674_v58 = vld [vmem:[#allocation7 + $0x80] sm:$0xf]  ;;  %v1732_v11 = vld [vmem:[#allocation7 + $0xf8] sm:$0xf0]  ;;  %s77_s3 = sadd.s32 1, %s2100_s3  }
  0x4c   : > { %v1675_v62 = vor.u32 %v1951_v59, %v1674_v58  ;;  %v1610_v58 = vld [vmem:[#allocation7] sm:$0xf]  ;;  %v1812_v48 = vld [vmem:[#allocation7 + $0x198] sm:$0xf0]  ;;  %p74_p0 = scmp.ge.s32.totalorder %s77_s3, 8  }
  0x4d   : > { %536 = vmatpush.bf16.msrb.mxu0 %v1360_v3  ;;  %v1983_v3 = vld [vmem:[#allocation7 + $0x18c] sm:$0xf0] }
  0x4e   : > { %562 = vmatpush.bf16.msrb.mxu2 %v1364_v4  ;;  %v1973_v4 = vld [vmem:[#allocation7 + $0x144] sm:$0xf]  ;;  %v1803_v7 = vor.u32 %v1983_v3, %v1802_v2  ;;  %v152_v3 = vperm.slane %v2192_v16, 3 }
  0x4f   : > { %575 = vmatpush.bf16.msrb.mxu3 %v1492_v5  ;;  %549 = vmatpush.bf16.msrb.mxu1 %v1488_v6 }
  0x50   : > { %537 = vmatmul.bf16.vlgmr.msrb.gmra.mxu0 %v2177_v53 }
  0x51   : > { %563 = vmatmul.bf16.vlgmr.msrb.gmra.mxu2 %v2177_v53  ;;  %v1723_v53 = vor.u32 %v1963_v14, %v1722_v13 }
  0x52   : > { %576 = vmatmul.bf16.vlgmr.msrb.gmra.mxu3 %v2179_v54  ;;  %550 = vmatmul.bf16.vlgmr.msrb.gmra.mxu1 %v2179_v54  ;;  %v1850_v54 = vld [vmem:[#allocation7 + $0x1e0] sm:$0xf] }
  0x53   : > { %1085 = vmatpush.bf16.msra.mxu3 %v1855_v9  ;;  %1046 = vmatpush.bf16.msra.mxu0 %v1723_v53  ;;  %v1851_v22 = vor.u32 %v1995_v19, %v1850_v54  ;;  %v1775_v9 = vor.u32 %v1973_v4, %v1772_v8  ;;  %v1660_v53 = vld [vmem:[#allocation7 + $0x70] sm:$0xf0]  ;;  %v1979_v54 = vld [vmem:[#allocation7 + $0x16c] sm:$0xf0]  ;;  %v1969_v19 = vld [vmem:[#allocation7 + $0x124] sm:$0xf]  ;;  %v1615_v8 = vor.u32 %v1933_v63, %v1612_v0 }
  0x54   : > { %1072 = vmatpush.bf16.msra.mxu2 %v1727_v18  ;;  %v1786_v18 = vld [vmem:[#allocation7 + $0x160] sm:$0xf]  ;;  %v1730_v4 = vld [vmem:[#allocation7 + $0xe8] sm:$0xf] }
  0x55   : > { %1059 = vmatpush.bf16.msra.mxu1 %v1851_v22  ;;  %v1787_v20 = vor.u32 %v1979_v54, %v1786_v18  ;;  %v1858_v54 = vld [vmem:[#allocation7 + $0x1e8] sm:$0xf] }
  0x57   : > { %1086 = vmatpush.bf16.msra.mxu3 %v1839_v12  ;;  %1047 = vmatpush.bf16.msra.mxu0 %v1707_v28  ;;  %v1945_v12 = vld [vmem:[#allocation7 + $0x64] sm:$0xf] }
  0x58   : > { %1073 = vmatpush.bf16.msra.mxu2 %v1711_v30  ;;  %v1663_v17 = vor.u32 %v1945_v12, %v1660_v53  ;;  %v1643_v30 = vor.u32 %v1943_v26, %v1642_v25  ;;  %v1967_v53 = vld [vmem:[#allocation7 + $0x10c] sm:$0xf0]  ;;  %v1714_v25 = vld [vmem:[#allocation7 + $0xc8] sm:$0xf]  ;;  %v1960_v26 = vld [vmem:[#allocation7 + $0xd4] sm:$0xf0] }
  0x59   : > { %1060 = vmatpush.bf16.msra.mxu1 %v1835_v35  ;;  %v1965_v35 = vld [vmem:[#allocation7 + $0x104] sm:$0xf]  ;;  %v1715_v31 = vor.u32 %v1960_v26, %v1714_v25 }
  0x5b   : > { %1087 = vmatpush.bf16.msra.mxu3 %v1823_v24  ;;  %1048 = vmatpush.bf16.msra.mxu0 %v1691_v44  ;;  %v1939_v44 = vld [vmem:[#allocation7 + $0x2c] sm:$0xf0] }
  0x5c   : > { %1074 = vmatpush.bf16.msra.mxu2 %v1695_v47  ;;  %v1627_v47 = vor.u32 %v1939_v44, %v1626_v41  ;;  %v1982_v41 = vld [vmem:[#allocation7 + $0x18c] sm:$0xf] }
  0x5d   : > { %1061 = vmatpush.bf16.msra.mxu1 %v1819_v51  ;;  %v1971_v51 = vld [vmem:[#allocation7 + $0x12c] sm:$0xf0] }
  0x5f   : > { %1088 = vmatpush.bf16.msra.mxu3 %v1807_v38  ;;  %1049 = vmatpush.bf16.msra.mxu0 %v1675_v62  ;;  %v1743_v38 = vor.u32 %v1965_v35, %v1740_v36  ;;  %v1935_v62 = vld [vmem:[#allocation7 + $0xc] sm:$0xf0] }
  0x60   : > { %1075 = vmatpush.bf16.msra.mxu2 %v1679_v1 }
  0x61   : > { %1062 = vmatpush.bf16.msra.mxu1 %v1803_v7  ;;  %v1611_v7 = vor.u32 %v1935_v62, %v1610_v58  ;;  %v1988_v62 = vld [vmem:[#allocation7 + $0x1b4] sm:$0xf0] }
  0x63   : > { %1089 = vmatpush.bf16.msra.mxu3 %v1791_v57  ;;  %1050 = vmatpush.bf16.msra.mxu0 %v1659_v15  ;;  %v1738_v15 = vld [vmem:[#allocation7 + $0x100] sm:$0xf] }
  0x64   : > { %1076 = vmatpush.bf16.msra.mxu2 %v1663_v17  ;;  %v1739_v18 = vor.u32 %v1967_v53, %v1738_v15  ;;  %v1810_v53 = vld [vmem:[#allocation7 + $0x188] sm:$0xf] }
  0x65   : > { %1063 = vmatpush.bf16.msra.mxu1 %v1787_v20  ;;  %v1986_v20 = vld [vmem:[#allocation7 + $0x1ac] sm:$0xf]  ;;  %v1794_v17 = vld [vmem:[#allocation7 + $0x168] sm:$0xf] }
  0x67   : > { %1090 = vmatpush.bf16.msra.mxu3 %v1775_v9  ;;  %1051 = vmatpush.bf16.msra.mxu0 %v1643_v30 }
  0x68   : > { %1077 = vmatpush.bf16.msra.mxu2 %v1647_v32  ;;  %v1958_v32 = vld [vmem:[#allocation7 + $0xcc] sm:$0xf] }
  0x6b   : > { %1052 = vmatpush.bf16.msra.mxu0 %v1627_v47 }
  0x6c   : > { %1078 = vmatpush.bf16.msra.mxu2 %v1631_v50 }
  0x6f   : > { %1053 = vmatpush.bf16.msra.mxu0 %v1611_v7 }
  0x70   : > { %1079 = vmatpush.bf16.msra.mxu2 %v1615_v8 }
  0xad   : > { %v486_v34 = vpop.f32.mrf.mxu0 }
  0xae   : > { %v487_v37 = vadd.f32 %v486_v34, %v149_v21  ;;  %v1756_v21 = vld [vmem:[#allocation7 + $0x130] sm:$0xf0]  ;;  %v1975_v34 = vld [vmem:[#allocation7 + $0x14c] sm:$0xf0] }
  0xaf   : > { %v1759_v24 = vor.u32 %v1969_v19, %v1756_v21  ;;  %v1996_v19 = vld [vmem:[#allocation7 + $0x1f4] sm:$0xf0] }
  0xb1   : > { %v499_v43 = vpop.f32.mrf.mxu1  ;;  %1091 = vmatpush.bf16.msra.mxu3 %v1759_v24  ;;  %v1828_v24 = vld [vmem:[#allocation7 + $0x1b8] sm:$0xf0] }
  0xb2   : > { %v500_v46 = vadd.f32 %v499_v43, %v487_v37  ;;  %v1771_v37 = vor.u32 %v1975_v34, %v1770_v33  ;;  %v1863_v43 = vor.u32 %v1994_v39, %v1860_v40  ;;  %v1831_v30 = vor.u32 %v1986_v20, %v1828_v24  ;;  %v1716_v33 = vld [vmem:[#allocation7 + $0xd8] sm:$0xf0]  ;;  %v1842_v34 = vld [vmem:[#allocation7 + $0x1c8] sm:$0xf]  ;;  %v1992_v40 = vld [vmem:[#allocation7 + $0x1d4] sm:$0xf0] }
  0xb3   : > { %v1719_v39 = vor.u32 %v1958_v32, %v1716_v33  ;;  %v1843_v47 = vor.u32 %v1992_v40, %v1842_v34  ;;  %v1780_v20 = vld [vmem:[#allocation7 + $0x158] sm:$0xf0] }
  0xb4   : > { %v512_v55 = vpop.f32.mrf.mxu2  ;;  %v1605_v56 = vmul.f32 -1.442695, %v500_v46  ;;  %1064 = vmatpush.bf16.msra.mxu1 %v1771_v37  ;;  %v1668_v33 = vld [vmem:[#allocation7 + $0x78] sm:$0xf0] }
  0xb5   : > { %v513_v60 = vadd.f32 %v512_v55, %v150_v42  ;;  %v525_v61 = vpop.f32.mrf.mxu3  ;;  %v488_v6 = vpop.f32.mrf.mxu0  ;;  %1092 = vmatpush.bf16.msra.mxu3 %v1743_v38  ;;  %v1844_v55 = vld [vmem:[#allocation7 + $0x1d8] sm:$0xf0] }
  0xb6   : > { %2009 = vpow2.f32 %v1605_v56  ;;  %v151_v56 = vperm.slane %v2192_v16, 2  ;;  %v81_v16 = vld [vmem:[#allocation3] sm:$0x3] }
  0xb7   : > { %v526_v5 = vadd.f32 %v525_v61, %v513_v60  ;;  %v1755_v60 = vor.u32 %v1971_v51, %v1754_v49  ;;  %v1847_v61 = vor.u32 %v1990_v52, %v1844_v55  ;;  %v1698_v49 = vld [vmem:[#allocation7 + $0xa8] sm:$0xf]  ;;  %v1815_v51 = vor.u32 %v1982_v41, %v1812_v48  ;;  %v1954_v52 = vld [vmem:[#allocation7 + $0xac] sm:$0xf]  ;;  %v1700_v55 = vld [vmem:[#allocation7 + $0xb8] sm:$0xf0] }
  0xb8   : > { %v1703_v58 = vor.u32 %v1954_v52, %v1700_v55  ;;  %v1650_v41 = vld [vmem:[#allocation7 + $0x48] sm:$0xf]  ;;  %v1966_v52 = vld [vmem:[#allocation7 + $0x10c] sm:$0xf]  ;;  %v1748_v55 = vld [vmem:[#allocation7 + $0x118] sm:$0xf0] }
  0xb9   : > { %v1606_v13 = vmul.f32 -1.442695, %v526_v5  ;;  %v501_v14 = vpop.f32.mrf.mxu1  ;;  %1137 = vmatpush.bf16.msrb.mxu3 %v1863_v43  ;;  %v1964_v5 = vld [vmem:[#allocation7 + $0xf4] sm:$0xf0]  ;;  %1065 = vmatpush.bf16.msra.mxu1 %v1755_v60  ;;  %v648_v60 = vld [vmem:[#allocation2 + $0x2] sm:$0x3] }
  0xba   : > { %v1731_v9 = vor.u32 %v1964_v5, %v1730_v4  ;;  %v1735_v14 = vor.u32 %v1962_v10, %v1732_v11  ;;  %v2247_v63 = vpack.c.bf16 %v648_v60, %v648_v60  ;;  %v1682_v4 = vld [vmem:[#allocation7 + $0x88] sm:$0xf]  ;;  %v1950_v10 = vld [vmem:[#allocation7 + $0x8c] sm:$0xf]  ;;  %v1684_v11 = vld [vmem:[#allocation7 + $0x98] sm:$0xf0] }
  0xbb   : > { %2011 = vpow2.f32 %v1606_v13  ;;  %v1687_v15 = vor.u32 %v1950_v10, %v1684_v11  ;;  %v1942_v43 = vld [vmem:[#allocation7 + $0x4c] sm:$0xf]  ;;  %v1778_v48 = vld [vmem:[#allocation7 + $0x148] sm:$0xf]  ;;  %v1620_v10 = vld [vmem:[#allocation7 + $0x18] sm:$0xf0] }
  0xbc   : > { %v2010_v22 = vpop.eup %2009  ;;  %v514_v23 = vpop.f32.mrf.mxu2  ;;  %1098 = vmatpush.bf16.msrb.mxu0 %v1731_v9  ;;  %1124 = vmatpush.bf16.msrb.mxu2 %v1735_v14  ;;  %v1952_v9 = vld [vmem:[#allocation7 + $0x94] sm:$0xf0] }
  0xbd   : > { %v2196_v28 = vadd.f32 1.0, %v2010_v22  ;;  %v527_v29 = vpop.f32.mrf.mxu3  ;;  %1138 = vmatpush.bf16.msrb.mxu3 %v1847_v61  ;;  %v1859_v23 = vor.u32 %v1996_v19, %v1858_v54  ;;  %1066 = vmatpush.bf16.msra.mxu1 %v1739_v18  ;;  %v1826_v61 = vld [vmem:[#allocation7 + $0x1a8] sm:$0xf]  ;;  %v1683_v14 = vor.u32 %v1952_v9, %v1682_v4  ;;  %v1984_v18 = vld [vmem:[#allocation7 + $0x194] sm:$0xf0] }
  0xbe   : > { %v1827_v0 = vor.u32 %v1988_v62, %v1826_v61  ;;  %v1974_v54 = vld [vmem:[#allocation7 + $0x14c] sm:$0xf]  ;;  %1093 = vmatmul.bf16.vlgmr.msra.gmra.mxu3 %v2247_v63  ;;  %v1811_v24 = vor.u32 %v1984_v18, %v1810_v53  ;;  %v1636_v61 = vld [vmem:[#allocation7 + $0x38] sm:$0xf0]  ;;  %v1751_v62 = vor.u32 %v1966_v52, %v1748_v55 }
  0xbf   : > { %2013 = vrcp.f32 %v2196_v28  ;;  %v594_v57 = vand.u32 2147483647, %v2196_v28  ;;  %v596_v2 = vand.u32 2147483648, %v2196_v28  ;;  %vm590_vm0 = vweird.f32 %v2196_v28  ;;  %v1934_v9 = vld [vmem:[#allocation7 + $0xc] sm:$0xf] }
  0xc0   : > { %1099 = vmatpush.bf16.msrb.mxu0 %v1715_v31  ;;  %1125 = vmatpush.bf16.msrb.mxu2 %v1719_v39  ;;  %v1783_v26 = vor.u32 %v1974_v54, %v1780_v20  ;;  %v1764_v39 = vld [vmem:[#allocation7 + $0x138] sm:$0xf0] }
  0xc1   : > { %v2012_v42 = vpop.eup %2011  ;;  %vm2214_vm2 = vcmp.eq.f32.partialorder %v594_v57, 8.507059e+37  ;;  %v597_v38 = vor.u32 1.1754944e-38, %v596_v2  ;;  %1111 = vmatpush.bf16.msrb.mxu1 %v1859_v23  ;;  %1139 = vmatpush.bf16.msrb.mxu3 %v1831_v30  ;;  %v1796_v2 = vld [vmem:[#allocation7 + $0x178] sm:$0xf0] }
  0xc2   : > { %v2199_v46 = vadd.f32 1.0, %v2012_v42  ;;  %1067 = vmatmul.bf16.vlgmr.msra.gmra.mxu1 %v2247_v63 }
  0xc4   : > { %2015 = vrcp.f32 %v2199_v46  ;;  %v613_v6 = vand.u32 2147483647, %v2199_v46  ;;  %v615_v12 = vand.u32 2147483648, %v2199_v46  ;;  %vm609_vm3 = vweird.f32 %v2199_v46  ;;  %1126 = vmatpush.bf16.msrb.mxu2 %v1703_v58  ;;  %v1938_v58 = vld [vmem:[#allocation7 + $0x2c] sm:$0xf] }
  0xc5   : > { %v2204_v59 = vpop.eup %2013  ;;  %1112 = vmatpush.bf16.msrb.mxu1 %v1843_v47  ;;  %1140 = vmatpush.bf16.msrb.mxu3 %v1815_v51  ;;  %v1652_v47 = vld [vmem:[#allocation7 + $0x58] sm:$0xf0] }
  0xc6   : > { %v586_v1 = vmul.f32 %v2204_v59, %v2196_v28  ;;  %vm591_vm1 = vweird.f32 %v2204_v59  ;;  %v616_v35 = vor.u32 1.1754944e-38, %v615_v12  ;;  %vm2242_vm7 = vcmp.eq.f32.partialorder %v613_v6, 8.507059e+37 }
  0xc7   : > { %vm2229_vm5 = vmor %vm590_vm0, %vm591_vm1 }
  0xc8   : > { %v587_v13 = vsub.f32 1.0, %v586_v1  ;;  %v1978_v1 = vld [vmem:[#allocation7 + $0x16c] sm:$0xf]  ;;  %1127 = vmatpush.bf16.msrb.mxu2 %v1687_v15  ;;  %v1623_v15 = vor.u32 %v1934_v9, %v1620_v10 }
  0xc9   : > { %v1799_v8 = vor.u32 %v1978_v1, %v1796_v2  ;;  %1113 = vmatpush.bf16.msrb.mxu1 %v1827_v0  ;;  %v1762_v0 = vld [vmem:[#allocation7 + $0x128] sm:$0xf]  ;;  %v1972_v1 = vld [vmem:[#allocation7 + $0x134] sm:$0xf0] }
  0xca   : > { %v2218_v21 = vpop.eup %2015  ;;  %v588_v22 = vmul.f32 %v2204_v59, %v587_v13  ;;  %v1763_v11 = vor.u32 %v1972_v1, %v1762_v0 }
  0xcb   : > { %v605_v27 = vmul.f32 %v2218_v21, %v2199_v46  ;;  %vm610_vm4 = vweird.f32 %v2218_v21  ;;  %v1956_v46 = vld [vmem:[#allocation7 + $0xb4] sm:$0xf0]  ;;  %1141 = vmatpush.bf16.msrb.mxu3 %v1799_v8 }
  0xcc   : > { %vm2237_vm6 = vmor %vm609_vm3, %vm610_vm4  ;;  %v589_v28 = vadd.f32 %v2204_v59, %v588_v22  ;;  %v1699_v57 = vor.u32 %v1956_v46, %v1698_v49  ;;  %v1976_v49 = vld [vmem:[#allocation7 + $0x154] sm:$0xf0]  ;;  %v1655_v46 = vor.u32 %v1942_v43, %v1652_v47 }
  0xcd   : > { %v538_v29 = vpop.f32.mrf.mxu0  ;;  %v606_v42 = vsub.f32 1.0, %v605_v27  ;;  %v1948_v27 = vld [vmem:[#allocation7 + $0x74] sm:$0xf0]  ;;  %1114 = vmatpush.bf16.msrb.mxu1 %v1811_v24  ;;  %v1779_v60 = vor.u32 %v1976_v49, %v1778_v48 }
  0xce   : > { %v539_v36 = vadd.f32 %v538_v29, %v151_v56  ;;  %v593_v5 = vsel %vm2229_vm5, %v2204_v59, %v589_v28  ;;  %1100 = vmatpush.bf16.msrb.mxu0 %v1699_v57  ;;  %v1946_v29 = vld [vmem:[#allocation7 + $0x6c] sm:$0xf]  ;;  %v1940_v57 = vld [vmem:[#allocation7 + $0x34] sm:$0xf0] }
  0xcf   : > { %v551_v44 = vpop.f32.mrf.mxu1  ;;  %v607_v56 = vmul.f32 %v2218_v21, %v606_v42  ;;  %v1671_v37 = vor.u32 %v1946_v29, %v1668_v33  ;;  %v1944_v42 = vld [vmem:[#allocation7 + $0x54] sm:$0xf0]  ;;  %1142 = vmatpush.bf16.msrb.mxu3 %v1783_v26  ;;  %v716_v33 = vld [vmem:[%s2334_s4] sm:$0xf] }
  0xd0   : > { %v552_v50 = vadd.f32 %v551_v44, %v539_v36  ;;  %v1651_v51 = vor.u32 %v1944_v42, %v1650_v41  ;;  %v720_v52 = vperm.slane %v716_v33, 2 }
  0xd1   : > { %v608_v6 = vadd.f32 %v2218_v21, %v607_v56  ;;  %1128 = vmatpush.bf16.msrb.mxu2 %v1671_v37  ;;  %v1634_v56 = vld [vmem:[#allocation7 + $0x28] sm:$0xf] }
  0xd2   : > { %2017 = vtanh.f32 %v552_v50  ;;  %1101 = vmatpush.bf16.msrb.mxu0 %v1683_v14  ;;  %v1635_v4 = vor.u32 %v1940_v57, %v1634_v56 }
  0xd3   : > { %v612_v59 = vsel %vm2237_vm6, %v2218_v21, %v608_v6  ;;  %v1666_v21 = vld [vmem:[#allocation7 + $0x68] sm:$0xf] }
  0xd4   : > { %v564_v7 = vpop.f32.mrf.mxu2  ;;  %v617_v22 = vsel %vm2242_vm7, %v616_v35, %v612_v59  ;;  %v1667_v32 = vor.u32 %v1948_v27, %v1666_v21  ;;  %v1980_v35 = vld [vmem:[#allocation7 + $0x174] sm:$0xf0]  ;;  %v1618_v6 = vld [vmem:[#allocation7 + $0x8] sm:$0xf] }
  0xd5   : > { %v565_v12 = vadd.f32 %v564_v7, %v152_v3  ;;  %v577_v13 = vpop.f32.mrf.mxu3  ;;  %v540_v19 = vpop.f32.mrf.mxu0  ;;  %v598_v3 = vsel %vm2214_vm2, %v597_v38, %v593_v5  ;;  %v639_v34 = vmul.f32 %v617_v22, %v81_v16  ;;  %v1970_v38 = vld [vmem:[#allocation7 + $0x12c] sm:$0xf]  ;;  %v1795_v40 = vor.u32 %v1980_v35, %v1794_v17  ;;  %1129 = vmatpush.bf16.msrb.mxu2 %v1655_v46  ;;  %v1936_v7 = vld [vmem:[#allocation7 + $0x14] sm:$0xf0] }
  0xd6   : > { %v1767_v45 = vor.u32 %v1970_v38, %v1764_v39  ;;  %1102 = vmatpush.bf16.msrb.mxu0 %v1667_v32  ;;  %v1639_v5 = vor.u32 %v1938_v58, %v1636_v61  ;;  %v1619_v14 = vor.u32 %v1936_v7, %v1618_v6  ;;  %v719_v39 = vperm.slane %v716_v33, 1 }
  0xd7   : > { %v578_v23 = vadd.f32 %v577_v13, %v565_v12  ;;  %v553_v25 = vpop.f32.mrf.mxu1  ;;  %1115 = vmatpush.bf16.msrb.mxu1 %v1795_v40  ;;  %v1746_v12 = vld [vmem:[#allocation7 + $0x108] sm:$0xf]  ;;  %v1968_v13 = vld [vmem:[#allocation7 + $0x114] sm:$0xf0] }
  0xd8   : > { %v2018_v30 = vpop.eup %2017  ;;  %1143 = vmatpush.bf16.msrb.mxu3 %v1767_v45  ;;  %v1747_v53 = vor.u32 %v1968_v13, %v1746_v12 }
  0xd9   : > { %v1607_v31 = vmul.f32 -1.442695, %v578_v23  ;;  %v640_v36 = vmul.f32 %v2018_v30, %v598_v3  ;;  %1130 = vmatpush.bf16.msrb.mxu2 %v1639_v5 }
  0xda   : > { %1103 = vmatpush.bf16.msrb.mxu0 %v1651_v51  ;;  %v721_v51 = vperm.slane %v716_v33, 3 }
  0xdb   : > { %2019 = vpow2.f32 %v1607_v31  ;;  %v641_v44 = vadd.f32 %v640_v36, %v639_v34  ;;  %1116 = vmatpush.bf16.msrb.mxu1 %v1779_v60  ;;  %v718_v34 = vperm.slane %v716_v33, 0 }
  0xdc   : > { %v566_v28 = vpop.f32.mrf.mxu2  ;;  %1144 = vmatpush.bf16.msrb.mxu3 %v1751_v62 }
  0xdd   : > { %v579_v50 = vpop.f32.mrf.mxu3  ;;  %645 = vst [vmem:[#allocation3] sm:$0x3] %v641_v44  ;;  %1131 = vmatpush.bf16.msrb.mxu2 %v1623_v15 }
  0xde   : > { %1104 = vmatpush.bf16.msrb.mxu0 %v1635_v4 }
  0xdf   : > { %1145 = vmatmul.bf16.vlgmr.msrb.gmra.mxu3 %v2247_v63  ;;  %1117 = vmatpush.bf16.msrb.mxu1 %v1763_v11 }
  0xe1   : > { %v2020_v2 = vpop.eup %2019 }
  0xe2   : > { %v623_v8 = vadd.f32 1.0, %v2020_v2  ;;  %1105 = vmatpush.bf16.msrb.mxu0 %v1619_v14 }
  0xe3   : > { %1118 = vmatpush.bf16.msrb.mxu1 %v1747_v53 }
  0xe4   : > { %2021 = vrcp.f32 %v623_v8  ;;  %v635_v19 = vand.u32 2147483648, %v623_v8  ;;  %v633_v16 = vand.u32 2147483647, %v623_v8  ;;  %vm629_vm9 = vweird.f32 %v623_v8 }
  0xe5   : > { %2023 = vtanh.f32 %v641_v44 }
  0xe6   : > { %1119 = vmatmul.bf16.vlgmr.msrb.gmra.mxu1 %v2247_v63  ;;  %v636_v22 = vor.u32 1.1754944e-38, %v635_v19  ;;  %vm634_vm11 = vcmp.eq.f32.partialorder %v633_v16, 8.507059e+37 }
  0xea   : > { %v2022_v18 = vpop.eup %2021 }
  0xeb   : > { %v625_v54 = vmul.f32 %v2022_v18, %v623_v8  ;;  %vm630_vm8 = vweird.f32 %v2022_v18  ;;  %v2024_v24 = vpop.eup %2023 }
  0xec   : > { %vm631_vm10 = vmor %vm629_vm9, %vm630_vm8  ;;  %vm1255_vm8 = vcmask (%p74_p0), 1041409   ;;  %vm1258_vm9 = vcmask (%p74_p0), 1042434  }
  0xed   : > { %v626_v59 = vsub.f32 1.0, %v625_v54 }
  0xef   : > { %v627_v20 = vmul.f32 %v2022_v18, %v626_v59  ;;  %v650_v59 = vld [vmem:[#allocation3 + $0x2] sm:$0x3] }
  0xf1   : > { %v628_v3 = vadd.f32 %v2022_v18, %v627_v20 }
  0xf3   : > { %v632_v23 = vsel %vm631_vm10, %v2022_v18, %v628_v3  ;;  %vm1261_vm10 = vcmask (%p74_p0), 1043459  }
  0xf4   : > { %v637_v25 = vsel %vm634_vm11, %v636_v22, %v632_v23  ;;  %vm1264_vm11 = vcmask (%p74_p0), 1044484  }
  0xf5   : > { %v643_v26 = vmul.f32 %v2024_v24, %v637_v25 }
  0xf7   : > { %644 = vst [vmem:[#allocation2] sm:$0x3] %v643_v26  ;;  %v646_v21 = vpack.c.bf16 %v643_v26, %v643_v26 }
  0xf9   : > { %1054 = vmatmul.bf16.vlgmr.msra.gmra.mxu0 %v646_v21  ;;  %1080 = vmatmul.bf16.vlgmr.msra.gmra.mxu2 %v646_v21 }
 0x109   : > { %1106 = vmatmul.bf16.vlgmr.msrb.gmra.mxu0 %v646_v21  ;;  %1132 = vmatmul.bf16.vlgmr.msrb.gmra.mxu2 %v646_v21 }
 0x13f   : > { %v1068_v27 = vpop.f32.mrf.mxu1 }
 0x141   : > { %v1094_v63 = vpop.f32.mrf.mxu3 }
 0x147   : > { %v1070_v29 = vpop.f32.mrf.mxu1 }
 0x149   : > { %v1096_v30 = vpop.f32.mrf.mxu3 }
 0x162   : > { %v1146_v31 = vpop.f32.mrf.mxu3 }
 0x163   : > { %v1120_v32 = vpop.f32.mrf.mxu1 }
 0x16a   : > { %v1148_v17 = vpop.f32.mrf.mxu3 }
 0x16b   : > { %v1122_v36 = vpop.f32.mrf.mxu1 }
 0x176   : > { %v1055_v37 = vpop.f32.mrf.mxu0 }
 0x177   : > { %v1056_v35 = vadd.f32 %v1055_v37, %v718_v34 }
 0x179   : > { %v1069_v38 = vadd.f32 %v1068_v27, %v1056_v35  ;;  %v1241_v35 = vld [vmem:[%s2335_s5 + $0x78] sm:$0xff] (%p74_p0) }
 0x17a   :  { %1276 = vmatpush.msra.mxu0 (%p74_p0), %v1241_v35  ;;  %1313 = vmatpush.msra.mxu1 (%p74_p0), %v1241_v35 }
 0x17b   : > { %v1864_v40 = vmul.f32 -1.442695, %v1069_v38  ;;  %v1240_v38 = vld [vmem:[%s2335_s5 + $0x70] sm:$0xff] (%p74_p0) }
 0x17c   : > { %v1081_v41 = vpop.f32.mrf.mxu2  ;;  %1277 = vmatpush.msra.mxu0 (%p74_p0), %v1240_v38  ;;  %1314 = vmatpush.msra.mxu1 (%p74_p0), %v1240_v38 }
 0x17d   : > { %2025 = vpow2.f32 %v1864_v40  ;;  %v1082_v42 = vadd.f32 %v1081_v41, %v719_v39  ;;  %v1239_v39 = vld [vmem:[%s2335_s5 + $0x68] sm:$0xff] (%p74_p0)  ;;  %v1238_v40 = vld [vmem:[%s2335_s5 + $0x60] sm:$0xff] (%p74_p0) }
 0x17e   : > { %v1057_v43 = vpop.f32.mrf.mxu0  ;;  %1278 = vmatpush.msra.mxu0 (%p74_p0), %v1239_v39  ;;  %1315 = vmatpush.msra.mxu1 (%p74_p0), %v1239_v39 }
 0x17f   : > { %v1095_v44 = vadd.f32 %v1094_v63, %v1082_v42  ;;  %v1237_v42 = vld [vmem:[%s2335_s5 + $0x58] sm:$0xff] (%p74_p0) }
 0x180   :  { %1279 = vmatpush.msra.mxu0 (%p74_p0), %v1238_v40  ;;  %1316 = vmatpush.msra.mxu1 (%p74_p0), %v1238_v40 }
 0x181   : > { %v1865_v28 = vmul.f32 -1.442695, %v1095_v44 }
 0x182   :  { %1280 = vmatpush.msra.mxu0 (%p74_p0), %v1237_v42  ;;  %1317 = vmatpush.msra.mxu1 (%p74_p0), %v1237_v42 }
 0x183   : > { %v2026_v45 = vpop.eup %2025  ;;  %2027 = vpow2.f32 %v1865_v28  ;;  %v1236_v28 = vld [vmem:[%s2335_s5 + $0x50] sm:$0xff] (%p74_p0) }
 0x184   : > { %v1153_v47 = vadd.f32 1.0, %v2026_v45  ;;  %v1083_v48 = vpop.f32.mrf.mxu2  ;;  %1281 = vmatpush.msra.mxu0 (%p74_p0), %v1236_v28  ;;  %1318 = vmatpush.msra.mxu1 (%p74_p0), %v1236_v28 }
 0x185   :  { %v1235_v48 = vld [vmem:[%s2335_s5 + $0x48] sm:$0xff] (%p74_p0) }
 0x186   : > { %2029 = vrcp.f32 %v1153_v47  ;;  %v1107_v49 = vpop.f32.mrf.mxu0  ;;  %v1165_v8 = vand.u32 2147483648, %v1153_v47  ;;  %vm1159_vm13 = vweird.f32 %v1153_v47  ;;  %v1163_v11 = vand.u32 2147483647, %v1153_v47  ;;  %1282 = vmatpush.msra.mxu0 (%p74_p0), %v1235_v48  ;;  %1319 = vmatpush.msra.mxu1 (%p74_p0), %v1235_v48 }
 0x187   : > { %v1108_v60 = vadd.f32 %v1107_v49, %v720_v52 }
 0x188   : > { %v1166_v53 = vor.u32 1.1754944e-38, %v1165_v8  ;;  %vm1164_vm1 = vcmp.eq.f32.partialorder %v1163_v11, 8.507059e+37  ;;  %v1230_v11 = vld [vmem:[%s2335_s5 + $0x20] sm:$0xff] (%p74_p0) }
 0x189   : > { %v2028_v50 = vpop.eup %2027  ;;  %v1121_v5 = vadd.f32 %v1120_v32, %v1108_v60  ;;  %v1233_v60 = vld [vmem:[%s2335_s5 + $0x38] sm:$0xff] (%p74_p0) }
 0x18a   : > { %v1172_v46 = vadd.f32 1.0, %v2028_v50 }
 0x18c   : > { %v2030_v55 = vpop.eup %2029  ;;  %2031 = vrcp.f32 %v1172_v46  ;;  %v1133_v56 = vpop.f32.mrf.mxu2  ;;  %v1184_v12 = vand.u32 2147483648, %v1172_v46  ;;  %v1182_v15 = vand.u32 2147483647, %v1172_v46  ;;  %vm1178_vm0 = vweird.f32 %v1172_v46 }
 0x18d   : > { %v1155_v57 = vmul.f32 %v2030_v55, %v1153_v47  ;;  %v1134_v58 = vadd.f32 %v1133_v56, %v721_v51  ;;  %vm1160_vm12 = vweird.f32 %v2030_v55 }
 0x18e   : > { %v1109_v61 = vpop.f32.mrf.mxu0  ;;  %vm1161_vm14 = vmor %vm1159_vm13, %vm1160_vm12  ;;  %v1185_v20 = vor.u32 1.1754944e-38, %v1184_v12  ;;  %vm1183_vm3 = vcmp.eq.f32.partialorder %v1182_v15, 8.507059e+37  ;;  %vm1267_vm12 = vcmask (%p74_p0), 1045509   ;;  %vm1270_vm13 = vcmask (%p74_p0), 1046534  }
 0x18f   : > { %v1156_v62 = vsub.f32 1.0, %v1155_v57  ;;  %v1147_v0 = vadd.f32 %v1146_v31, %v1134_v58 }
 0x191   : > { %v1157_v1 = vmul.f32 %v2030_v55, %v1156_v62  ;;  %v1866_v2 = vmul.f32 -1.442695, %v1147_v0  ;;  %v1232_v0 = vld [vmem:[%s2335_s5 + $0x30] sm:$0xff] (%p74_p0) }
 0x192   : > { %v2032_v4 = vpop.eup %2031 }
 0x193   : > { %v1174_v6 = vmul.f32 %v2032_v4, %v1172_v46  ;;  %v1158_v7 = vadd.f32 %v2030_v55, %v1157_v1  ;;  %2033 = vpow2.f32 %v1866_v2  ;;  %vm1179_vm15 = vweird.f32 %v2032_v4 }
 0x194   : > { %v1135_v9 = vpop.f32.mrf.mxu2  ;;  %2035 = vtanh.f32 %v1121_v5  ;;  %vm1180_vm2 = vmor %vm1178_vm0, %vm1179_vm15  ;;  %vm1296_vm15 = vcmask (%p74_p0), 15360  }
 0x195   : > { %v1175_v10 = vsub.f32 1.0, %v1174_v6  ;;  %v1162_v14 = vsel %vm1161_vm14, %v2030_v55, %v1158_v7  ;;  %v1234_v55 = vld [vmem:[%s2335_s5 + $0x40] sm:$0xff] (%p74_p0)  ;;  %v1231_v7 = vld [vmem:[%s2335_s5 + $0x28] sm:$0xff] (%p74_p0)  ;;  %vm1273_vm14 = vcmask (%p74_p0), 1047559  }
 0x196   : > { %v1167_v19 = vsel %vm1164_vm1, %v1166_v53, %v1162_v14  ;;  %1283 = vmatpush.msra.mxu0 (%p74_p0), %v1234_v55  ;;  %1320 = vmatpush.msra.mxu1 (%p74_p0), %v1234_v55  ;;  %v1229_v14 = vld [vmem:[%s2335_s5 + $0x18] sm:$0xff] (%p74_p0) }
 0x197   : > { %v1176_v13 = vmul.f32 %v2032_v4, %v1175_v10 }
 0x198   :  { %1284 = vmatpush.msra.mxu0 (%p74_p0), %v1233_v60  ;;  %1321 = vmatpush.msra.mxu1 (%p74_p0), %v1233_v60 }
 0x199   : > { %v2034_v18 = vpop.eup %2033  ;;  %v1177_v54 = vadd.f32 %v2032_v4, %v1176_v13 }
 0x19a   : > { %v1192_v16 = vadd.f32 1.0, %v2034_v18  ;;  %v2036_v22 = vpop.eup %2035  ;;  %1285 = vmatpush.msra.mxu0 (%p74_p0), %v1232_v0  ;;  %1322 = vmatpush.msra.mxu1 (%p74_p0), %v1232_v0 }
 0x19b   : > { %v1181_v3 = vsel %vm1180_vm2, %v2032_v4, %v1177_v54  ;;  %v1209_v25 = vmul.f32 %v2036_v22, %v1167_v19  ;;  %v1228_v19 = vld [vmem:[%s2335_s5 + $0x10] sm:$0xff] (%p74_p0) }
 0x19c   : > { %v1186_v23 = vsel %vm1183_vm3, %v1185_v20, %v1181_v3  ;;  %2037 = vrcp.f32 %v1192_v16  ;;  %v1204_v29 = vand.u32 2147483648, %v1192_v16  ;;  %v1202_v31 = vand.u32 2147483647, %v1192_v16  ;;  %1286 = vmatpush.msra.mxu0 (%p74_p0), %v1231_v7  ;;  %1323 = vmatpush.msra.mxu1 (%p74_p0), %v1231_v7  ;;  %v1227_v3 = vld [vmem:[%s2335_s5 + $0x8] sm:$0xff] (%p74_p0) }
 0x19d   : > { %v1208_v24 = vmul.f32 %v1186_v23, %v650_v59  ;;  %vm1198_vm5 = vweird.f32 %v1192_v16 }
 0x19e   : > { %v1205_v33 = vor.u32 1.1754944e-38, %v1204_v29  ;;  %vm1203_vm7 = vcmp.eq.f32.partialorder %v1202_v31, 8.507059e+37  ;;  %1287 = vmatpush.msra.mxu0 (%p74_p0), %v1230_v11  ;;  %1324 = vmatpush.msra.mxu1 (%p74_p0), %v1230_v11 }
 0x19f   : > { %v1210_v26 = vadd.f32 %v1209_v25, %v1208_v24  ;;  %v1226_v24 = vld [vmem:[%s2335_s5] sm:$0xff] (%p74_p0) }
 0x1a0   :  { %1288 = vmatpush.msra.mxu0 (%p74_p0), %v1229_v14  ;;  %1325 = vmatpush.msra.mxu1 (%p74_p0), %v1229_v14 }
 0x1a1   : > { %1214 = vst [vmem:[#allocation3 + $0x2] sm:$0x3] %v1210_v26  ;;  %2039 = vtanh.f32 %v1210_v26 }
 0x1a2   : > { %v2038_v21 = vpop.eup %2037  ;;  %1289 = vmatpush.msra.mxu0 (%p74_p0), %v1228_v19  ;;  %1326 = vmatpush.msra.mxu1 (%p74_p0), %v1228_v19 }
 0x1a3   : > { %v1194_v27 = vmul.f32 %v2038_v21, %v1192_v16  ;;  %vm1199_vm4 = vweird.f32 %v2038_v21 }
 0x1a4   : > { %vm1200_vm6 = vmor %vm1198_vm5, %vm1199_vm4  ;;  %1290 = vmatpush.msra.mxu0 (%p74_p0), %v1227_v3  ;;  %1327 = vmatpush.msra.mxu1 (%p74_p0), %v1227_v3 }
 0x1a5   : > { %v1195_v63 = vsub.f32 1.0, %v1194_v27 }
 0x1a6   :  { %1291 = vmatpush.msra.mxu0 (%p74_p0), %v1226_v24  ;;  %1328 = vmatpush.msra.mxu1 (%p74_p0), %v1226_v24 }
 0x1a7   : > { %v1196_v30 = vmul.f32 %v2038_v21, %v1195_v63  ;;  %v2040_v34 = vpop.eup %2039 }
 0x1a9   : > { %v1197_v32 = vadd.f32 %v2038_v21, %v1196_v30 }
 0x1ab   : > { %v1201_v17 = vsel %vm1200_vm6, %v2038_v21, %v1197_v32  ;;  %v2041_v21 = vld [vmem:[%s2336_s6] ss:$0 sm:$0xff] (%p74_p0) }
 0x1ac   : > { %v1206_v36 = vsel %vm1203_vm7, %v1205_v33, %v1201_v17  ;;  %76 = sbr.rel (!%p74_p0) target bundleno = 14 (0xe), region = 76 }
 0x1ad   : > { %v1212_v37 = vmul.f32 %v2040_v34, %v1206_v36 }
 0x1af   : > { %1213 = vst [vmem:[#allocation2 + $0x2] sm:$0x3] %v1212_v37 }
 0x1b0   : > { %1217 = vst [vmem:[%s1216_s30] sm:$0x3] %v1212_v37 }
 0x1b7   :  { %v1219_v41 = vld [vmem:[#allocation4 + $0x2] sm:$0x3]  ;;  %v1218_v43 = vld [vmem:[#allocation4] sm:$0x3]  ;;  %v1220_v44 = vld [vmem:[#allocation4 + $0x4] sm:$0x3] }
 0x1b8   :  { %v1254_v45 = vrot.slane %v1219_v41, 7  ;;  %v1298_v47 = vrot.slane %v1218_v43, 1  ;;  %v1221_v49 = vld [vmem:[#allocation4 + $0x6] sm:$0x3]  ;;  %v1257_v50 = vrot.slane %v1220_v44, 6  ;;  %v1300_v51 = vrot.slane %v1220_v44, 7 }
 0x1b9   :  { %v1222_v56 = vld [vmem:[#allocation4 + $0x8] sm:$0x3]  ;;  %v1260_v57 = vrot.slane %v1221_v49, 5  ;;  %v1302_v58 = vrot.slane %v1221_v49, 6  ;;  %v1223_v1 = vld [vmem:[#allocation4 + $0xa] sm:$0x3] }
 0x1ba   :  { %v1256_v46 = vsel %vm1255_vm8, %v1254_v45, %v1218_v43  ;;  %v1299_v52 = vsel %vm1255_vm8, %v1219_v41, %v1298_v47  ;;  %v1263_v2 = vrot.slane %v1222_v56, 4  ;;  %v1304_v4 = vrot.slane %v1222_v56, 5  ;;  %v1224_v8 = vld [vmem:[#allocation4 + $0xc] sm:$0x3]  ;;  %v1225_v15 = vld [vmem:[#allocation4 + $0xe] sm:$0x3] }
 0x1bb   :  { %v1259_v61 = vsel %vm1258_vm9, %v1257_v50, %v1256_v46  ;;  %v1301_v62 = vsel %vm1258_vm9, %v1300_v51, %v1299_v52  ;;  %v1266_v9 = vrot.slane %v1223_v1, 3  ;;  %v1306_v10 = vrot.slane %v1223_v1, 4 }
 0x1bc   :  { %v1262_v5 = vsel %vm1261_vm10, %v1260_v57, %v1259_v61  ;;  %v1303_v6 = vsel %vm1261_vm10, %v1302_v58, %v1301_v62  ;;  %v1269_v53 = vrot.slane %v1224_v8, 2  ;;  %v1308_v18 = vrot.slane %v1224_v8, 3 }
 0x1bd   :  { %v1265_v12 = vsel %vm1264_vm11, %v1263_v2, %v1262_v5  ;;  %v1305_v13 = vsel %vm1264_vm11, %v1304_v4, %v1303_v6  ;;  %v1272_v20 = vrot.slane %v1225_v15, 1  ;;  %v1310_v16 = vrot.slane %v1225_v15, 2 }
 0x1be   :  { %v1268_v54 = vsel %vm1267_vm12, %v1266_v9, %v1265_v12  ;;  %v1307_v59 = vsel %vm1267_vm12, %v1306_v10, %v1305_v13 }
 0x1bf   :  { %v1271_v22 = vsel %vm1270_vm13, %v1269_v53, %v1268_v54  ;;  %v1309_v23 = vsel %vm1270_vm13, %v1308_v18, %v1307_v59 }
 0x1c0   :  { %v1274_v25 = vsel %vm1273_vm14, %v1272_v20, %v1271_v22  ;;  %v1311_v26 = vsel %vm1273_vm14, %v1310_v16, %v1309_v23 }
 0x1c1   :  { %1292 = vmatmul.f32.vlgmr.msra.gmra.mxu0 %v1274_v25  ;;  %1329 = vmatmul.f32.vlgmr.msra.gmra.mxu1 %v1311_v26 }
 0x23e   :  { %v1293_v27 = vpop.f32.mrf.mxu0  ;;  %v1330_v63 = vpop.f32.mrf.mxu1 }
 0x23f   :  { %v1294_v29 = vadd.f32 %v2041_v21, %v1293_v27  ;;  %v1331_v30 = vadd.f32 %v2041_v21, %v1330_v63 }
 0x241   :  { %1297 = vst.msk [vmem:[%s2339_s9] sm:$0xff] %vm1296_vm15, %v1294_v29 }
 0x242   :  { %1868 = vst.msk [vmem:[%s2339_s9 + $0x8] sm:$0xff] %vm1296_vm15, %v1331_v30 }
 0x243   :  { %1339 = vsyncpa [#allocation6], 1 }
 0x244   :  { %1340 = vsyncpa [#allocation8], 1 }

// kernel: si_model1_forward.2
= control target key start
LH: loop header
LB: loop body
LE: loop exit
PB: predicated region body
PF: predicated region fallthrough
CT: control target
= control target key end

     0   :  { %8 = vsyncpa [#allocation3], 0  ;;  %s2354_s0 = inlined_call_operand.hbm [shape: f32[2,8,1024], index: 0, kind: input, shape index: {}]   ;;  %s2355_s1 = inlined_call_operand.hbm [shape: bf16[1024,128], index: 1, kind: input, shape index: {}]   ;;  %s2356_s2 = inlined_call_operand.vmem [shape: f32[1,128], index: 2, kind: input, shape index: {}]   ;;  %s2357_s3 = inlined_call_operand.vmem [shape: bf16[8,2,128], index: 3, kind: output, shape index: {}]  }
   0x1   :  { %s14_s14 = sshll.u32 %s2354_s0, 4  ;;  %s15_s14 = int_to_ptr.hbm [resolvable:$true] %s14_s14 }
   0x2   :  { %9 = vsyncpa [#allocation5], 0  ;;  %s2171_s15 = smov [#allocation2]   ;;  %s27_s19 = sshll.u32 %s2355_s1, 4  ;;  %s28_s19 = int_to_ptr.hbm [resolvable:$true] %s27_s19 }
   0x3   :  { %s16_s16 = sshll.u32 %s2171_s15, 4  ;;  %s2172_s20 = smov 1024   ;;  %s17_s16 = int_to_ptr.vmem [resolvable:$true] %s16_s16 }
   0x4   :  { %s2173_s21 = smov 64   ;;  %s2174_s22 = smov [#allocation4]  }
   0x5   :  { %22 = dma.hbm_to_vmem [thread:$0]  %s15_s14, 2048, %s17_s16, [#allocation3], %s2172_s20, %s2172_s20, %s2173_s21  }
   0x6   :  { %s29_s23 = sshll.u32 %s2174_s22, 4  ;;  %s2175_s24 = smov 4   ;;  %s30_s23 = int_to_ptr.vmem [resolvable:$true] %s29_s23 }
   0x7   :  { %35 = dma.hbm_to_vmem [thread:$0]  %s28_s19, 8192, %s30_s23, [#allocation5], %s2173_s21, %s2173_s21, %s2175_s24  }
   0x8   :  { %2167 = dma.done.wait [#allocation3], 2048  }
   0x9   :  { %2168 = vsyncadd [#allocation3], 4294965248 }
   0xa   :  { %2169 = dma.done.wait [#allocation5], 8192  }
   0xb   :  { %2170 = vsyncadd [#allocation5], 4294959104  ;;  %v1991_v0 = vld [vmem:[#allocation4 + $0x38] sm:$0xff]  ;;  %v1990_v4 = vld [vmem:[#allocation4 + $0x30] sm:$0xff]  ;;  %vm686_vm0 = vcmask 1040384   ;;  %vm691_vm1 = vcmask 1041409  }
   0xc   :  { %v1999_v1 = vld [vmem:[#allocation4 + $0x78] sm:$0xff]  ;;  %578 = vmatpush.bf16.msra.mxu0 %v1991_v0  ;;  %v1998_v5 = vld [vmem:[#allocation4 + $0x70] sm:$0xff]  ;;  %v1989_v8 = vld [vmem:[#allocation4 + $0x28] sm:$0xff]  ;;  %vm695_vm2 = vcmask 1042434   ;;  %vm699_vm3 = vcmask 1043459  }
   0xd   :  { %v2007_v2 = vld [vmem:[#allocation4 + $0xb8] sm:$0xff]  ;;  %591 = vmatpush.bf16.msra.mxu1 %v1999_v1  ;;  %v2006_v6 = vld [vmem:[#allocation4 + $0xb0] sm:$0xff]  ;;  %v1997_v9 = vld [vmem:[#allocation4 + $0x68] sm:$0xff]  ;;  %vm728_vm4 = vsmask.f32 256 }
   0xe   :  { %v2015_v3 = vld [vmem:[#allocation4 + $0xf8] sm:$0xff]  ;;  %604 = vmatpush.bf16.msra.mxu2 %v2007_v2  ;;  %v2014_v7 = vld [vmem:[#allocation4 + $0xf0] sm:$0xff]  ;;  %v2005_v10 = vld [vmem:[#allocation4 + $0xa8] sm:$0xff]  ;;  %vm1432_vm6 = vsmask.f32 7938 }
   0xf   :  { %617 = vmatpush.bf16.msra.mxu3 %v2015_v3  ;;  %v2013_v11 = vld [vmem:[#allocation4 + $0xe8] sm:$0xff]  ;;  %v1988_v12 = vld [vmem:[#allocation4 + $0x20] sm:$0xff]  ;;  %v1987_v16 = vld [vmem:[#allocation4 + $0x18] sm:$0xff] }
  0x10   :  { %579 = vmatpush.bf16.msra.mxu0 %v1990_v4  ;;  %v1996_v13 = vld [vmem:[#allocation4 + $0x60] sm:$0xff]  ;;  %v1995_v17 = vld [vmem:[#allocation4 + $0x58] sm:$0xff]  ;;  %v1986_v20 = vld [vmem:[#allocation4 + $0x10] sm:$0xff] }
  0x11   :  { %592 = vmatpush.bf16.msra.mxu1 %v1998_v5  ;;  %v2004_v14 = vld [vmem:[#allocation4 + $0xa0] sm:$0xff]  ;;  %v2003_v18 = vld [vmem:[#allocation4 + $0x98] sm:$0xff]  ;;  %v1994_v21 = vld [vmem:[#allocation4 + $0x50] sm:$0xff] }
  0x12   :  { %605 = vmatpush.bf16.msra.mxu2 %v2006_v6  ;;  %v2012_v15 = vld [vmem:[#allocation4 + $0xe0] sm:$0xff]  ;;  %v2011_v19 = vld [vmem:[#allocation4 + $0xd8] sm:$0xff]  ;;  %v2002_v22 = vld [vmem:[#allocation4 + $0x90] sm:$0xff] }
  0x13   :  { %618 = vmatpush.bf16.msra.mxu3 %v2014_v7  ;;  %v2010_v23 = vld [vmem:[#allocation4 + $0xd0] sm:$0xff]  ;;  %v1985_v24 = vld [vmem:[#allocation4 + $0x8] sm:$0xff]  ;;  %v1984_v28 = vld [vmem:[#allocation4] sm:$0xff] }
  0x14   :  { %580 = vmatpush.bf16.msra.mxu0 %v1989_v8  ;;  %v1993_v25 = vld [vmem:[#allocation4 + $0x48] sm:$0xff]  ;;  %v1992_v29 = vld [vmem:[#allocation4 + $0x40] sm:$0xff]  ;;  %v2023_v32 = vld [vmem:[#allocation4 + $0x138] sm:$0xff] }
  0x15   :  { %593 = vmatpush.bf16.msra.mxu1 %v1997_v9  ;;  %v2001_v26 = vld [vmem:[#allocation4 + $0x88] sm:$0xff]  ;;  %v2000_v30 = vld [vmem:[#allocation4 + $0x80] sm:$0xff]  ;;  %v48_v33 = vld [vmem:[#allocation2 + $0x10] sm:$0xff] }
  0x16   :  { %606 = vmatpush.bf16.msra.mxu2 %v2005_v10  ;;  %v2009_v27 = vld [vmem:[#allocation4 + $0xc8] sm:$0xff]  ;;  %v2008_v31 = vld [vmem:[#allocation4 + $0xc0] sm:$0xff]  ;;  %v2031_v35 = vld [vmem:[#allocation4 + $0x178] sm:$0xff]  ;;  %v56_v40 = vpack.c.bf16 %v48_v33, %v48_v33 }
  0x17   :  { %619 = vmatpush.bf16.msra.mxu3 %v2013_v11  ;;  %v46_v34 = vld [vmem:[#allocation2] sm:$0xff]  ;;  %v49_v36 = vld [vmem:[#allocation2 + $0x18] sm:$0xff]  ;;  %v47_v37 = vld [vmem:[#allocation2 + $0x8] sm:$0xff] }
  0x18   :  { %581 = vmatpush.bf16.msra.mxu0 %v1988_v12  ;;  %v2039_v38 = vld [vmem:[#allocation4 + $0x1b8] sm:$0xff]  ;;  %v54_v41 = vpack.c.bf16 %v46_v34, %v46_v34  ;;  %v57_v42 = vpack.c.bf16 %v49_v36, %v49_v36  ;;  %v55_v43 = vpack.c.bf16 %v47_v37, %v47_v37  ;;  %v2022_v44 = vld [vmem:[#allocation4 + $0x130] sm:$0xff]  ;;  %v2021_v48 = vld [vmem:[#allocation4 + $0x128] sm:$0xff] }
  0x19   :  { %594 = vmatpush.bf16.msra.mxu1 %v1996_v13  ;;  %v2047_v39 = vld [vmem:[#allocation4 + $0x1f8] sm:$0xff]  ;;  %v2030_v45 = vld [vmem:[#allocation4 + $0x170] sm:$0xff]  ;;  %v2029_v49 = vld [vmem:[#allocation4 + $0x168] sm:$0xff] }
  0x1a   :  { %607 = vmatpush.bf16.msra.mxu2 %v2004_v14  ;;  %v2038_v46 = vld [vmem:[#allocation4 + $0x1b0] sm:$0xff]  ;;  %v2037_v50 = vld [vmem:[#allocation4 + $0x1a8] sm:$0xff]  ;;  %v2020_v52 = vld [vmem:[#allocation4 + $0x120] sm:$0xff] }
  0x1b   :  { %620 = vmatpush.bf16.msra.mxu3 %v2012_v15  ;;  %v2046_v47 = vld [vmem:[#allocation4 + $0x1f0] sm:$0xff]  ;;  %v2045_v51 = vld [vmem:[#allocation4 + $0x1e8] sm:$0xff]  ;;  %v2028_v53 = vld [vmem:[#allocation4 + $0x160] sm:$0xff] }
  0x1c   :  { %582 = vmatpush.bf16.msra.mxu0 %v1987_v16  ;;  %v2036_v54 = vld [vmem:[#allocation4 + $0x1a0] sm:$0xff]  ;;  %v2019_v56 = vld [vmem:[#allocation4 + $0x118] sm:$0xff]  ;;  %v2018_v60 = vld [vmem:[#allocation4 + $0x110] sm:$0xff] }
  0x1d   :  { %595 = vmatpush.bf16.msra.mxu1 %v1995_v17  ;;  %v2044_v55 = vld [vmem:[#allocation4 + $0x1e0] sm:$0xff]  ;;  %v2027_v57 = vld [vmem:[#allocation4 + $0x158] sm:$0xff]  ;;  %v2026_v61 = vld [vmem:[#allocation4 + $0x150] sm:$0xff] }
  0x1e   :  { %608 = vmatpush.bf16.msra.mxu2 %v2003_v18  ;;  %v2035_v58 = vld [vmem:[#allocation4 + $0x198] sm:$0xff]  ;;  %v2034_v62 = vld [vmem:[#allocation4 + $0x190] sm:$0xff]  ;;  %v2017_v0 = vld [vmem:[#allocation4 + $0x108] sm:$0xff] }
  0x1f   :  { %621 = vmatpush.bf16.msra.mxu3 %v2011_v19  ;;  %v2043_v59 = vld [vmem:[#allocation4 + $0x1d8] sm:$0xff]  ;;  %v2042_v63 = vld [vmem:[#allocation4 + $0x1d0] sm:$0xff]  ;;  %v2025_v1 = vld [vmem:[#allocation4 + $0x148] sm:$0xff] }
  0x20   :  { %583 = vmatpush.bf16.msra.mxu0 %v1986_v20  ;;  %v2033_v2 = vld [vmem:[#allocation4 + $0x188] sm:$0xff]  ;;  %v2016_v4 = vld [vmem:[#allocation4 + $0x100] sm:$0xff]  ;;  %v2055_v8 = vld [vmem:[#allocation4 + $0x38] sm:$0xff] }
  0x21   :  { %596 = vmatpush.bf16.msra.mxu1 %v1994_v21  ;;  %v2041_v3 = vld [vmem:[#allocation4 + $0x1c8] sm:$0xff]  ;;  %v2024_v5 = vld [vmem:[#allocation4 + $0x140] sm:$0xff]  ;;  %v52_v9 = vld [vmem:[#allocation2 + $0x30] sm:$0xff] }
  0x22   :  { %609 = vmatpush.bf16.msra.mxu2 %v2002_v22  ;;  %v2032_v6 = vld [vmem:[#allocation4 + $0x180] sm:$0xff]  ;;  %v2063_v11 = vld [vmem:[#allocation4 + $0x78] sm:$0xff]  ;;  %v51_v13 = vld [vmem:[#allocation2 + $0x28] sm:$0xff]  ;;  %v60_v16 = vpack.c.bf16 %v52_v9, %v52_v9 }
  0x23   :  { %622 = vmatpush.bf16.msra.mxu3 %v2010_v23  ;;  %v2040_v7 = vld [vmem:[#allocation4 + $0x1c0] sm:$0xff]  ;;  %v53_v12 = vld [vmem:[#allocation2 + $0x38] sm:$0xff]  ;;  %v59_v19 = vpack.c.bf16 %v51_v13, %v51_v13  ;;  %v2054_v20 = vld [vmem:[#allocation4 + $0x30] sm:$0xff] }
  0x24   :  { %584 = vmatpush.bf16.msra.mxu0 %v1985_v24  ;;  %v50_v10 = vld [vmem:[#allocation2 + $0x20] sm:$0xff]  ;;  %v2071_v14 = vld [vmem:[#allocation4 + $0xb8] sm:$0xff]  ;;  %v61_v18 = vpack.c.bf16 %v53_v12, %v53_v12  ;;  %v2062_v21 = vld [vmem:[#allocation4 + $0x70] sm:$0xff] }
  0x25   :  { %597 = vmatpush.bf16.msra.mxu1 %v1993_v25  ;;  %v2079_v15 = vld [vmem:[#allocation4 + $0xf8] sm:$0xff]  ;;  %v58_v17 = vpack.c.bf16 %v50_v10, %v50_v10  ;;  %v2070_v22 = vld [vmem:[#allocation4 + $0xb0] sm:$0xff]  ;;  %v2053_v24 = vld [vmem:[#allocation4 + $0x28] sm:$0xff] }
  0x26   :  { %610 = vmatpush.bf16.msra.mxu2 %v2001_v26  ;;  %v2078_v23 = vld [vmem:[#allocation4 + $0xf0] sm:$0xff]  ;;  %v2061_v25 = vld [vmem:[#allocation4 + $0x68] sm:$0xff]  ;;  %v2059_v33 = vld [vmem:[#allocation4 + $0x58] sm:$0xff] }
  0x27   :  { %623 = vmatpush.bf16.msra.mxu3 %v2009_v27  ;;  %v2069_v26 = vld [vmem:[#allocation4 + $0xa8] sm:$0xff]  ;;  %v2067_v34 = vld [vmem:[#allocation4 + $0x98] sm:$0xff]  ;;  %v2050_v36 = vld [vmem:[#allocation4 + $0x10] sm:$0xff] }
  0x28   :  { %585 = vmatpush.bf16.msra.mxu0 %v1984_v28  ;;  %v2077_v27 = vld [vmem:[#allocation4 + $0xe8] sm:$0xff]  ;;  %v2052_v28 = vld [vmem:[#allocation4 + $0x20] sm:$0xff]  ;;  %v2058_v37 = vld [vmem:[#allocation4 + $0x50] sm:$0xff] }
  0x29   :  { %598 = vmatpush.bf16.msra.mxu1 %v1992_v29  ;;  %v2060_v29 = vld [vmem:[#allocation4 + $0x60] sm:$0xff]  ;;  %v2091_v9 = vld [vmem:[#allocation4 + $0x158] sm:$0xff]  ;;  %v2082_v12 = vld [vmem:[#allocation4 + $0x110] sm:$0xff] }
  0x2a   :  { %611 = vmatpush.bf16.msra.mxu2 %v2000_v30  ;;  %v2068_v30 = vld [vmem:[#allocation4 + $0xa0] sm:$0xff]  ;;  %v2099_v10 = vld [vmem:[#allocation4 + $0x198] sm:$0xff]  ;;  %v2090_v13 = vld [vmem:[#allocation4 + $0x150] sm:$0xff] }
  0x2b   :  { %624 = vmatpush.bf16.msra.mxu3 %v2008_v31  ;;  %586 = vmatmul.bf16.vlgmr.msra.gmra.mxu0 %v54_v41  ;;  %v2076_v31 = vld [vmem:[#allocation4 + $0xe0] sm:$0xff]  ;;  %v2057_v41 = vld [vmem:[#allocation4 + $0x48] sm:$0xff]  ;;  %vm2210_vm5 = vmand %vm686_vm0, %vm728_vm4 }
  0x2c   :  { %630 = vmatpush.bf16.msrb.mxu0 %v2023_v32  ;;  %599 = vmatmul.bf16.vlgmr.msra.gmra.mxu1 %v55_v43  ;;  %v2051_v32 = vld [vmem:[#allocation4 + $0x18] sm:$0xff]  ;;  %v2073_v43 = vld [vmem:[#allocation4 + $0xc8] sm:$0xff]  ;;  %vm2286_vm7 = vmand %vm686_vm0, %vm1432_vm6 }
  0x2d   :  { %643 = vmatpush.bf16.msrb.mxu1 %v2031_v35  ;;  %612 = vmatmul.bf16.vlgmr.msra.gmra.mxu2 %v56_v40  ;;  %v2075_v35 = vld [vmem:[#allocation4 + $0xd8] sm:$0xff]  ;;  %v2049_v40 = vld [vmem:[#allocation4 + $0x8] sm:$0xff] }
  0x2e   :  { %656 = vmatpush.bf16.msrb.mxu2 %v2039_v38  ;;  %625 = vmatmul.bf16.vlgmr.msra.gmra.mxu3 %v57_v42  ;;  %v2066_v38 = vld [vmem:[#allocation4 + $0x90] sm:$0xff]  ;;  %v2065_v42 = vld [vmem:[#allocation4 + $0x88] sm:$0xff] }
  0x2f   :  { %669 = vmatpush.bf16.msrb.mxu3 %v2047_v39  ;;  %v2074_v39 = vld [vmem:[#allocation4 + $0xd0] sm:$0xff] }
  0x30   :  { %631 = vmatpush.bf16.msrb.mxu0 %v2022_v44  ;;  %v2048_v44 = vld [vmem:[#allocation4] sm:$0xff] }
  0x31   :  { %644 = vmatpush.bf16.msrb.mxu1 %v2030_v45  ;;  %v2056_v45 = vld [vmem:[#allocation4 + $0x40] sm:$0xff] }
  0x32   :  { %657 = vmatpush.bf16.msrb.mxu2 %v2038_v46  ;;  %v2064_v46 = vld [vmem:[#allocation4 + $0x80] sm:$0xff] }
  0x33   :  { %670 = vmatpush.bf16.msrb.mxu3 %v2046_v47  ;;  %v2072_v47 = vld [vmem:[#allocation4 + $0xc0] sm:$0xff] }
  0x34   :  { %632 = vmatpush.bf16.msrb.mxu0 %v2021_v48  ;;  %v2087_v48 = vld [vmem:[#allocation4 + $0x138] sm:$0xff] }
  0x35   :  { %645 = vmatpush.bf16.msrb.mxu1 %v2029_v49  ;;  %v757_v49 = vld [vmem:[#allocation2 + $0x50] sm:$0xff] }
  0x36   :  { %658 = vmatpush.bf16.msrb.mxu2 %v2037_v50  ;;  %v755_v50 = vld [vmem:[#allocation2 + $0x40] sm:$0xff] }
  0x37   :  { %671 = vmatpush.bf16.msrb.mxu3 %v2045_v51  ;;  %v2095_v51 = vld [vmem:[#allocation4 + $0x178] sm:$0xff] }
  0x38   :  { %633 = vmatpush.bf16.msrb.mxu0 %v2020_v52  ;;  %v758_v52 = vld [vmem:[#allocation2 + $0x58] sm:$0xff] }
  0x39   :  { %646 = vmatpush.bf16.msrb.mxu1 %v2028_v53  ;;  %v756_v53 = vld [vmem:[#allocation2 + $0x48] sm:$0xff] }
  0x3a   :  { %659 = vmatpush.bf16.msrb.mxu2 %v2036_v54  ;;  %v2103_v54 = vld [vmem:[#allocation4 + $0x1b8] sm:$0xff] }
  0x3b   :  { %672 = vmatpush.bf16.msrb.mxu3 %v2044_v55  ;;  %v2111_v55 = vld [vmem:[#allocation4 + $0x1f8] sm:$0xff] }
  0x3c   :  { %634 = vmatpush.bf16.msrb.mxu0 %v2019_v56  ;;  %v765_v56 = vpack.c.bf16 %v757_v49, %v757_v49 }
  0x3d   :  { %647 = vmatpush.bf16.msrb.mxu1 %v2027_v57  ;;  %v763_v57 = vpack.c.bf16 %v755_v50, %v755_v50 }
  0x3e   :  { %660 = vmatpush.bf16.msrb.mxu2 %v2035_v58  ;;  %v766_v58 = vpack.c.bf16 %v758_v52, %v758_v52 }
  0x3f   :  { %673 = vmatpush.bf16.msrb.mxu3 %v2043_v59  ;;  %v764_v59 = vpack.c.bf16 %v756_v53, %v756_v53 }
  0x40   :  { %635 = vmatpush.bf16.msrb.mxu0 %v2018_v60  ;;  %v2086_v60 = vld [vmem:[#allocation4 + $0x130] sm:$0xff] }
  0x41   :  { %648 = vmatpush.bf16.msrb.mxu1 %v2026_v61  ;;  %v2094_v61 = vld [vmem:[#allocation4 + $0x170] sm:$0xff] }
  0x42   :  { %661 = vmatpush.bf16.msrb.mxu2 %v2034_v62  ;;  %v2102_v62 = vld [vmem:[#allocation4 + $0x1b0] sm:$0xff] }
  0x43   :  { %674 = vmatpush.bf16.msrb.mxu3 %v2042_v63  ;;  %v2110_v63 = vld [vmem:[#allocation4 + $0x1f0] sm:$0xff] }
  0x44   :  { %636 = vmatpush.bf16.msrb.mxu0 %v2017_v0  ;;  %v2085_v0 = vld [vmem:[#allocation4 + $0x128] sm:$0xff] }
  0x45   :  { %649 = vmatpush.bf16.msrb.mxu1 %v2025_v1  ;;  %v2093_v1 = vld [vmem:[#allocation4 + $0x168] sm:$0xff] }
  0x46   :  { %662 = vmatpush.bf16.msrb.mxu2 %v2033_v2  ;;  %v2101_v2 = vld [vmem:[#allocation4 + $0x1a8] sm:$0xff] }
  0x47   :  { %675 = vmatpush.bf16.msrb.mxu3 %v2041_v3  ;;  %v2109_v3 = vld [vmem:[#allocation4 + $0x1e8] sm:$0xff] }
  0x48   :  { %637 = vmatpush.bf16.msrb.mxu0 %v2016_v4  ;;  %v2084_v4 = vld [vmem:[#allocation4 + $0x120] sm:$0xff] }
  0x49   :  { %650 = vmatpush.bf16.msrb.mxu1 %v2024_v5  ;;  %v2092_v5 = vld [vmem:[#allocation4 + $0x160] sm:$0xff] }
  0x4a   :  { %663 = vmatpush.bf16.msrb.mxu2 %v2032_v6  ;;  %v2100_v6 = vld [vmem:[#allocation4 + $0x1a0] sm:$0xff] }
  0x4b   :  { %676 = vmatpush.bf16.msrb.mxu3 %v2040_v7  ;;  %638 = vmatmul.bf16.vlgmr.msrb.gmra.mxu0 %v58_v17  ;;  %v2108_v7 = vld [vmem:[#allocation4 + $0x1e0] sm:$0xff]  ;;  %v2089_v17 = vld [vmem:[#allocation4 + $0x148] sm:$0xff] }
  0x4c   :  { %1287 = vmatpush.bf16.msra.mxu0 %v2055_v8  ;;  %651 = vmatmul.bf16.vlgmr.msrb.gmra.mxu1 %v59_v19  ;;  %v2083_v8 = vld [vmem:[#allocation4 + $0x118] sm:$0xff]  ;;  %v2105_v19 = vld [vmem:[#allocation4 + $0x1c8] sm:$0xff] }
  0x4d   :  { %1300 = vmatpush.bf16.msra.mxu1 %v2063_v11  ;;  %664 = vmatmul.bf16.vlgmr.msrb.gmra.mxu2 %v60_v16  ;;  %v2107_v11 = vld [vmem:[#allocation4 + $0x1d8] sm:$0xff]  ;;  %v2081_v16 = vld [vmem:[#allocation4 + $0x108] sm:$0xff] }
  0x4e   :  { %1313 = vmatpush.bf16.msra.mxu2 %v2071_v14  ;;  %677 = vmatmul.bf16.vlgmr.msrb.gmra.mxu3 %v61_v18  ;;  %v2098_v14 = vld [vmem:[#allocation4 + $0x190] sm:$0xff]  ;;  %v2097_v18 = vld [vmem:[#allocation4 + $0x188] sm:$0xff] }
  0x4f   :  { %1326 = vmatpush.bf16.msra.mxu3 %v2079_v15  ;;  %v2106_v15 = vld [vmem:[#allocation4 + $0x1d0] sm:$0xff] }
  0x50   :  { %1288 = vmatpush.bf16.msra.mxu0 %v2054_v20  ;;  %v2080_v20 = vld [vmem:[#allocation4 + $0x100] sm:$0xff] }
  0x51   :  { %1301 = vmatpush.bf16.msra.mxu1 %v2062_v21  ;;  %v2088_v21 = vld [vmem:[#allocation4 + $0x140] sm:$0xff] }
  0x52   :  { %1314 = vmatpush.bf16.msra.mxu2 %v2070_v22  ;;  %v2096_v22 = vld [vmem:[#allocation4 + $0x180] sm:$0xff] }
  0x53   :  { %1327 = vmatpush.bf16.msra.mxu3 %v2078_v23  ;;  %v759_v23 = vld [vmem:[#allocation2 + $0x60] sm:$0xff] }
  0x54   :  { %1289 = vmatpush.bf16.msra.mxu0 %v2053_v24  ;;  %v760_v24 = vld [vmem:[#allocation2 + $0x68] sm:$0xff] }
  0x55   :  { %1302 = vmatpush.bf16.msra.mxu1 %v2061_v25  ;;  %v2104_v25 = vld [vmem:[#allocation4 + $0x1c0] sm:$0xff] }
  0x56   :  { %1315 = vmatpush.bf16.msra.mxu2 %v2069_v26  ;;  %v761_v26 = vld [vmem:[#allocation2 + $0x70] sm:$0xff] }
  0x57   :  { %1328 = vmatpush.bf16.msra.mxu3 %v2077_v27  ;;  %v762_v27 = vld [vmem:[#allocation2 + $0x78] sm:$0xff] }
  0x58   :  { %1290 = vmatpush.bf16.msra.mxu0 %v2052_v28  ;;  %v767_v28 = vpack.c.bf16 %v759_v23, %v759_v23 }
  0x59   :  { %1303 = vmatpush.bf16.msra.mxu1 %v2060_v29  ;;  %v768_v29 = vpack.c.bf16 %v760_v24, %v760_v24  ;;  %v748_v24 = vld [vmem:[%s2357_s3 + $0x6] sm:$0x1] }
  0x5a   :  { %1316 = vmatpush.bf16.msra.mxu2 %v2068_v30  ;;  %v769_v30 = vpack.c.bf16 %v761_v26, %v761_v26 }
  0x5b   :  { %1329 = vmatpush.bf16.msra.mxu3 %v2076_v31  ;;  %v770_v31 = vpack.c.bf16 %v762_v27, %v762_v27  ;;  %v751_v27 = vld [vmem:[%s2357_s3 + $0x7] sm:$0x1] }
  0x5c   :  { %1291 = vmatpush.bf16.msra.mxu0 %v2051_v32 }
  0x5d   :  { %1304 = vmatpush.bf16.msra.mxu1 %v2059_v33 }
  0x5e   :  { %1317 = vmatpush.bf16.msra.mxu2 %v2067_v34 }
  0x5f   :  { %1330 = vmatpush.bf16.msra.mxu3 %v2075_v35 }
  0x60   :  { %1292 = vmatpush.bf16.msra.mxu0 %v2050_v36 }
  0x61   :  { %1305 = vmatpush.bf16.msra.mxu1 %v2058_v37 }
  0x62   :  { %1318 = vmatpush.bf16.msra.mxu2 %v2066_v38  ;;  %v2117_v38 = vld [vmem:[%s2356_s2] ss:$0 sm:$0xff] }
  0x63   :  { %1331 = vmatpush.bf16.msra.mxu3 %v2074_v39 }
  0x64   :  { %1293 = vmatpush.bf16.msra.mxu0 %v2049_v40 }
  0x65   :  { %1306 = vmatpush.bf16.msra.mxu1 %v2057_v41 }
  0x66   :  { %1319 = vmatpush.bf16.msra.mxu2 %v2065_v42 }
  0x67   :  { %1332 = vmatpush.bf16.msra.mxu3 %v2073_v43 }
  0x68   :  { %1294 = vmatpush.bf16.msra.mxu0 %v2048_v44 }
  0x69   :  { %1307 = vmatpush.bf16.msra.mxu1 %v2056_v45 }
  0x6a   :  { %1320 = vmatpush.bf16.msra.mxu2 %v2064_v46 }
  0x6b   :  { %1333 = vmatpush.bf16.msra.mxu3 %v2072_v47  ;;  %1295 = vmatmul.bf16.vlgmr.msra.gmra.mxu0 %v763_v57 }
  0x6c   :  { %1339 = vmatpush.bf16.msrb.mxu0 %v2087_v48  ;;  %1308 = vmatmul.bf16.vlgmr.msra.gmra.mxu1 %v764_v59 }
  0x6d   :  { %1352 = vmatpush.bf16.msrb.mxu1 %v2095_v51  ;;  %1321 = vmatmul.bf16.vlgmr.msra.gmra.mxu2 %v765_v56 }
  0x6e   :  { %1365 = vmatpush.bf16.msrb.mxu2 %v2103_v54  ;;  %1334 = vmatmul.bf16.vlgmr.msra.gmra.mxu3 %v766_v58 }
  0x6f   :  { %1378 = vmatpush.bf16.msrb.mxu3 %v2111_v55 }
  0x70   :  { %1340 = vmatpush.bf16.msrb.mxu0 %v2086_v60 }
  0x71   :  { %1353 = vmatpush.bf16.msrb.mxu1 %v2094_v61 }
  0x72   :  { %1366 = vmatpush.bf16.msrb.mxu2 %v2102_v62 }
  0x73   :  { %1379 = vmatpush.bf16.msrb.mxu3 %v2110_v63 }
  0x74   :  { %1341 = vmatpush.bf16.msrb.mxu0 %v2085_v0 }
  0x75   :  { %1354 = vmatpush.bf16.msrb.mxu1 %v2093_v1 }
  0x76   :  { %1367 = vmatpush.bf16.msrb.mxu2 %v2101_v2 }
  0x77   :  { %1380 = vmatpush.bf16.msrb.mxu3 %v2109_v3 }
  0x78   :  { %1342 = vmatpush.bf16.msrb.mxu0 %v2084_v4 }
  0x79   :  { %1355 = vmatpush.bf16.msrb.mxu1 %v2092_v5  ;;  %v730_v5 = vld [vmem:[%s2357_s3] sm:$0x1] }
  0x7a   :  { %1368 = vmatpush.bf16.msrb.mxu2 %v2100_v6 }
  0x7b   :  { %1381 = vmatpush.bf16.msrb.mxu3 %v2108_v7  ;;  %v733_v7 = vld [vmem:[%s2357_s3 + $0x1] sm:$0x1] }
  0x7c   :  { %1343 = vmatpush.bf16.msrb.mxu0 %v2083_v8 }
  0x7d   :  { %1356 = vmatpush.bf16.msrb.mxu1 %v2091_v9 }
  0x7e   :  { %1369 = vmatpush.bf16.msrb.mxu2 %v2099_v10 }
  0x7f   :  { %1382 = vmatpush.bf16.msrb.mxu3 %v2107_v11 }
  0x80   :  { %1344 = vmatpush.bf16.msrb.mxu0 %v2082_v12  ;;  %v736_v12 = vld [vmem:[%s2357_s3 + $0x2] sm:$0x1] }
  0x81   :  { %1357 = vmatpush.bf16.msrb.mxu1 %v2090_v13  ;;  %v742_v13 = vld [vmem:[%s2357_s3 + $0x4] sm:$0x1] }
  0x82   :  { %1370 = vmatpush.bf16.msrb.mxu2 %v2098_v14 }
  0x83   :  { %1383 = vmatpush.bf16.msrb.mxu3 %v2106_v15 }
  0x84   :  { %1345 = vmatpush.bf16.msrb.mxu0 %v2081_v16 }
  0x85   :  { %1358 = vmatpush.bf16.msrb.mxu1 %v2089_v17 }
  0x86   :  { %1371 = vmatpush.bf16.msrb.mxu2 %v2097_v18  ;;  %v739_v18 = vld [vmem:[%s2357_s3 + $0x3] sm:$0x1] }
  0x87   :  { %1384 = vmatpush.bf16.msrb.mxu3 %v2105_v19  ;;  %v745_v19 = vld [vmem:[%s2357_s3 + $0x5] sm:$0x1] }
  0x88   :  { %1346 = vmatpush.bf16.msrb.mxu0 %v2080_v20 }
  0x89   :  { %1359 = vmatpush.bf16.msrb.mxu1 %v2088_v21 }
  0x8a   :  { %1372 = vmatpush.bf16.msrb.mxu2 %v2096_v22 }
  0x8b   :  { %1385 = vmatpush.bf16.msrb.mxu3 %v2104_v25  ;;  %1347 = vmatmul.bf16.vlgmr.msrb.gmra.mxu0 %v767_v28 }
  0x8c   :  { %1360 = vmatmul.bf16.vlgmr.msrb.gmra.mxu1 %v768_v29 }
  0x8d   :  { %1373 = vmatmul.bf16.vlgmr.msrb.gmra.mxu2 %v769_v30 }
  0x8e   :  { %1386 = vmatmul.bf16.vlgmr.msrb.gmra.mxu3 %v770_v31 }
  0xa8   :  { %v587_v32 = vpop.f32.mrf.mxu0 }
  0xa9   :  { %v600_v33 = vpop.f32.mrf.mxu1  ;;  %v588_v40 = vadd.f32 %v2117_v38, %v587_v32  ;;  %v2118_v38 = vld [vmem:[%s2356_s2] ss:$0 sm:$0xff] }
  0xab   :  { %v601_v42 = vadd.f32 %v600_v33, %v588_v40 }
  0xb0   :  { %v613_v34 = vpop.f32.mrf.mxu2  ;;  %v589_v36 = vpop.f32.mrf.mxu0 }
  0xb1   :  { %v626_v35 = vpop.f32.mrf.mxu3  ;;  %v602_v37 = vpop.f32.mrf.mxu1  ;;  %v614_v43 = vadd.f32 %v613_v34, %v601_v42 }
  0xb3   :  { %v627_v44 = vadd.f32 %v626_v35, %v614_v43 }
  0xb8   :  { %v615_v39 = vpop.f32.mrf.mxu2 }
  0xb9   :  { %v628_v41 = vpop.f32.mrf.mxu3 }
  0xc8   :  { %v639_v45 = vpop.f32.mrf.mxu0 }
  0xc9   :  { %v640_v46 = vadd.f32 %v639_v45, %v627_v44  ;;  %v652_v47 = vpop.f32.mrf.mxu1 }
  0xcb   :  { %v653_v48 = vadd.f32 %v652_v47, %v640_v46 }
  0xd0   :  { %v665_v49 = vpop.f32.mrf.mxu2  ;;  %v641_v52 = vpop.f32.mrf.mxu0 }
  0xd1   :  { %v666_v50 = vadd.f32 %v665_v49, %v653_v48  ;;  %v678_v51 = vpop.f32.mrf.mxu3  ;;  %v654_v54 = vpop.f32.mrf.mxu1 }
  0xd3   :  { %v679_v53 = vadd.f32 %v678_v51, %v666_v50 }
  0xd5   :  { %v682_v55 = vmax.f32 %v679_v53, 0.0 }
  0xd7   :  { %v683_v56 = vpack.c.bf16 %v682_v55, %v682_v55 }
  0xd8   :  { %v667_v57 = vpop.f32.mrf.mxu2 }
  0xd9   :  { %v685_v58 = vrot.slane %v683_v56, 3  ;;  %v680_v59 = vpop.f32.mrf.mxu3 }
  0xdb   :  { %v689_v60 = vsel %vm686_vm0, %v683_v56, %v685_v58  ;;  %v692_v61 = vsel %vm691_vm1, %v683_v56, %v685_v58  ;;  %v696_v62 = vsel %vm695_vm2, %v683_v56, %v685_v58  ;;  %v700_v63 = vsel %vm699_vm3, %v683_v56, %v685_v58 }
  0xdc   :  { %v694_v0 = vrot.slane %v692_v61, 1  ;;  %v698_v1 = vrot.slane %v696_v62, 2  ;;  %v702_v2 = vrot.slane %v700_v63, 3  ;;  %v704_v3 = vunpack.i.h.s16 %v689_v60 }
  0xdd   :  { %v1720_v6 = vpack.i.b16 %v689_v60, %v689_v60 }
  0xde   :  { %v706_v8 = vunpack.i.h.s16 %v694_v0  ;;  %v708_v9 = vunpack.i.h.s16 %v698_v1  ;;  %v710_v10 = vunpack.i.h.s16 %v702_v2  ;;  %v712_v11 = vpack.i.b16 %v704_v3, %v704_v3 }
  0xdf   :  { %v1721_v14 = vpack.i.b16 %v694_v0, %v694_v0  ;;  %v1722_v15 = vpack.i.b16 %v698_v1, %v698_v1  ;;  %v1723_v16 = vpack.i.b16 %v702_v2, %v702_v2  ;;  %v731_v17 = vsel %vm2210_vm5, %v1720_v6, %v730_v5 }
  0xe0   :  { %v714_v20 = vpack.i.b16 %v706_v8, %v706_v8  ;;  %v716_v21 = vpack.i.b16 %v708_v9, %v708_v9  ;;  %v718_v22 = vpack.i.b16 %v710_v10, %v710_v10  ;;  %732 = vst [vmem:[%s2357_s3] sm:$0x1] %v731_v17  ;;  %v734_v23 = vsel %vm2210_vm5, %v712_v11, %v733_v7 }
  0xe1   :  { %735 = vst [vmem:[%s2357_s3 + $0x1] sm:$0x1] %v734_v23  ;;  %v737_v25 = vsel %vm2210_vm5, %v1721_v14, %v736_v12  ;;  %v743_v26 = vsel %vm2210_vm5, %v1722_v15, %v742_v13  ;;  %v749_v30 = vsel %vm2210_vm5, %v1723_v16, %v748_v24 }
  0xe2   :  { %738 = vst [vmem:[%s2357_s3 + $0x2] sm:$0x1] %v737_v25  ;;  %v740_v28 = vsel %vm2210_vm5, %v714_v20, %v739_v18  ;;  %v746_v29 = vsel %vm2210_vm5, %v716_v21, %v745_v19  ;;  %v752_v31 = vsel %vm2210_vm5, %v718_v22, %v751_v27 }
  0xe3   :  { %741 = vst [vmem:[%s2357_s3 + $0x3] sm:$0x1] %v740_v28 }
  0xe4   :  { %744 = vst [vmem:[%s2357_s3 + $0x4] sm:$0x1] %v743_v26 }
  0xe5   :  { %747 = vst [vmem:[%s2357_s3 + $0x5] sm:$0x1] %v746_v29 }
  0xe6   :  { %750 = vst [vmem:[%s2357_s3 + $0x6] sm:$0x1] %v749_v30 }
  0xe7   :  { %753 = vst [vmem:[%s2357_s3 + $0x7] sm:$0x1] %v752_v31  ;;  %v1434_v10 = vld [vmem:[%s2357_s3] sm:$0x1] }
  0xe8   :  { %v1296_v32 = vpop.f32.mrf.mxu0  ;;  %v1437_v15 = vld [vmem:[%s2357_s3 + $0x1] sm:$0x1] }
  0xe9   :  { %v1309_v33 = vpop.f32.mrf.mxu1  ;;  %v1297_v41 = vadd.f32 %v2118_v38, %v1296_v32  ;;  %v1440_v20 = vld [vmem:[%s2357_s3 + $0x2] sm:$0x1] }
  0xea   :  { %v1443_v23 = vld [vmem:[%s2357_s3 + $0x3] sm:$0x1] }
  0xeb   :  { %v1310_v42 = vadd.f32 %v1309_v33, %v1297_v41  ;;  %v1446_v21 = vld [vmem:[%s2357_s3 + $0x4] sm:$0x1] }
  0xec   :  { %v1449_v25 = vld [vmem:[%s2357_s3 + $0x5] sm:$0x1] }
  0xed   :  { %v1452_v28 = vld [vmem:[%s2357_s3 + $0x6] sm:$0x1] }
  0xee   :  { %v1455_v30 = vld [vmem:[%s2357_s3 + $0x7] sm:$0x1] }
  0xf0   :  { %v1322_v34 = vpop.f32.mrf.mxu2  ;;  %v1298_v36 = vpop.f32.mrf.mxu0 }
  0xf1   :  { %v1335_v35 = vpop.f32.mrf.mxu3  ;;  %v1311_v37 = vpop.f32.mrf.mxu1  ;;  %v1323_v43 = vadd.f32 %v1322_v34, %v1310_v42 }
  0xf3   :  { %v1336_v44 = vadd.f32 %v1335_v35, %v1323_v43 }
  0xf8   :  { %v1324_v39 = vpop.f32.mrf.mxu2 }
  0xf9   :  { %v1337_v40 = vpop.f32.mrf.mxu3 }
 0x108   :  { %v1348_v45 = vpop.f32.mrf.mxu0 }
 0x109   :  { %v1361_v46 = vpop.f32.mrf.mxu1  ;;  %v1349_v47 = vadd.f32 %v1348_v45, %v1336_v44 }
 0x10b   :  { %v1362_v48 = vadd.f32 %v1361_v46, %v1349_v47 }
 0x110   :  { %v1374_v49 = vpop.f32.mrf.mxu2  ;;  %v1350_v52 = vpop.f32.mrf.mxu0 }
 0x111   :  { %v1387_v50 = vpop.f32.mrf.mxu3  ;;  %v1375_v51 = vadd.f32 %v1374_v49, %v1362_v48  ;;  %v1363_v53 = vpop.f32.mrf.mxu1 }
 0x113   :  { %v1388_v54 = vadd.f32 %v1387_v50, %v1375_v51 }
 0x115   :  { %v1391_v55 = vmax.f32 %v1388_v54, 0.0 }
 0x117   :  { %v1392_v56 = vpack.c.bf16 %v1391_v55, %v1391_v55 }
 0x118   :  { %v1376_v57 = vpop.f32.mrf.mxu2 }
 0x119   :  { %v1389_v58 = vpop.f32.mrf.mxu3  ;;  %v1394_v59 = vrot.slane %v1392_v56, 3 }
 0x11b   :  { %v1397_v60 = vsel %vm686_vm0, %v1392_v56, %v1394_v59  ;;  %v1399_v61 = vsel %vm691_vm1, %v1392_v56, %v1394_v59  ;;  %v1402_v62 = vsel %vm695_vm2, %v1392_v56, %v1394_v59  ;;  %v1405_v63 = vsel %vm699_vm3, %v1392_v56, %v1394_v59 }
 0x11c   :  { %v1401_v1 = vrot.slane %v1399_v61, 1  ;;  %v1404_v2 = vrot.slane %v1402_v62, 2  ;;  %v1407_v3 = vrot.slane %v1405_v63, 3  ;;  %v1409_v4 = vunpack.i.h.s16 %v1397_v60 }
 0x11d   :  { %v1980_v5 = vpack.i.b16 %v1397_v60, %v1397_v60 }
 0x11e   :  { %v1411_v6 = vunpack.i.h.s16 %v1401_v1  ;;  %v1413_v7 = vunpack.i.h.s16 %v1404_v2  ;;  %v1415_v8 = vunpack.i.h.s16 %v1407_v3  ;;  %v1417_v9 = vpack.i.b16 %v1409_v4, %v1409_v4 }
 0x11f   :  { %v1981_v11 = vpack.i.b16 %v1401_v1, %v1401_v1  ;;  %v1982_v12 = vpack.i.b16 %v1404_v2, %v1404_v2  ;;  %v1983_v13 = vpack.i.b16 %v1407_v3, %v1407_v3  ;;  %v1435_v14 = vsel %vm2286_vm7, %v1980_v5, %v1434_v10 }
 0x120   :  { %v1419_v16 = vpack.i.b16 %v1411_v6, %v1411_v6  ;;  %v1421_v17 = vpack.i.b16 %v1413_v7, %v1413_v7  ;;  %v1423_v18 = vpack.i.b16 %v1415_v8, %v1415_v8  ;;  %1436 = vst [vmem:[%s2357_s3] sm:$0x1] %v1435_v14  ;;  %v1438_v19 = vsel %vm2286_vm7, %v1417_v9, %v1437_v15 }
 0x121   :  { %1439 = vst [vmem:[%s2357_s3 + $0x1] sm:$0x1] %v1438_v19  ;;  %v1441_v22 = vsel %vm2286_vm7, %v1981_v11, %v1440_v20  ;;  %v1447_v24 = vsel %vm2286_vm7, %v1982_v12, %v1446_v21  ;;  %v1453_v29 = vsel %vm2286_vm7, %v1983_v13, %v1452_v28 }
 0x122   :  { %1442 = vst [vmem:[%s2357_s3 + $0x2] sm:$0x1] %v1441_v22  ;;  %v1444_v26 = vsel %vm2286_vm7, %v1419_v16, %v1443_v23  ;;  %v1450_v27 = vsel %vm2286_vm7, %v1421_v17, %v1449_v25  ;;  %v1456_v31 = vsel %vm2286_vm7, %v1423_v18, %v1455_v30 }
 0x123   :  { %1445 = vst [vmem:[%s2357_s3 + $0x3] sm:$0x1] %v1444_v26 }
 0x124   :  { %1448 = vst [vmem:[%s2357_s3 + $0x4] sm:$0x1] %v1447_v24 }
 0x125   :  { %1451 = vst [vmem:[%s2357_s3 + $0x5] sm:$0x1] %v1450_v27 }
 0x126   :  { %1454 = vst [vmem:[%s2357_s3 + $0x6] sm:$0x1] %v1453_v29 }
 0x127   :  { %1457 = vst [vmem:[%s2357_s3 + $0x7] sm:$0x1] %v1456_v31 }
 0x128   :  { %1462 = vsyncpa [#allocation3], 1 }
 0x129   :  { %1463 = vsyncpa [#allocation5], 1 }

</bundles_post_ra>
